<compile_context>
chip_gen: v5e
topology: v5e:2x2
jax: 0.10.0
libtpu: 0.0.40
codegen_flags: <defaults>
</compile_context>

<pallas_src>
import functools

import jax
import jax.numpy as jnp
from jax import lax
from jax.experimental import pallas as pl
from jax.experimental.pallas import tpu as pltpu

_VMEM_LIMIT = 32 * 1024 * 1024   # safe on v5e/v6e (128 MiB) and v7x (64 MiB)


# ----------------------------------------------------------------------------
# Kernel A: synthetic prob head (1x1 conv over channels + sigmoid) fused with
# the edge-filter masking from LFNet.post_process.  Channels-first, row-tiled.
# ----------------------------------------------------------------------------
def _prob_mask_kernel(x_ref, wp_ref, rshape_ref, o_ref, *, C, TH, W, fw):
    b = pl.program_id(0)
    h0 = pl.program_id(1) * TH

    # per-channel weighted sum: each x_ref[0, c] is a dense (TH, W) tile with
    # W on the lane axis -> full-width VPU adds (no channels-last lane waste).
    acc = x_ref[0, 0] * wp_ref[0]
    for c in range(1, C):                      # tiny C -> unrolled
        acc = acc + x_ref[0, c] * wp_ref[c]
    prob = jax.nn.sigmoid(acc + wp_ref[C])     # wp_ref[C] is the bias (EUP slot)

    rows = h0 + lax.broadcasted_iota(jnp.int32, (TH, W), 0)
    cols = lax.broadcasted_iota(jnp.int32, (TH, W), 1)
    rh = rshape_ref[b, 0]
    rw = rshape_ref[b, 1]
    bad = (rows < fw) | (cols < fw) | (rows >= rh - fw) | (cols >= rw - fw)
    o_ref[0] = jnp.where(bad, jnp.float32(-1.0), prob)


def _row_tile(H):
    for th in (32, 24, 16, 8):
        if H % th == 0:
            return th
    return H


def prob_and_mask(x_nchw, wparams, r_shape, fw):
    B, C, H, W = x_nchw.shape
    TH = _row_tile(H)
    kernel = functools.partial(_prob_mask_kernel, C=C, TH=TH, W=W, fw=fw)
    return pl.pallas_call(
        kernel,
        grid=(B, H // TH),
        in_specs=[
            pl.BlockSpec((1, C, TH, W), lambda b, h: (b, 0, h, 0)),
            pl.BlockSpec(memory_space=pltpu.MemorySpace.SMEM),   # conv w + bias
            pl.BlockSpec(memory_space=pltpu.MemorySpace.SMEM),   # r_shape (B,2)
        ],
        out_specs=pl.BlockSpec((1, TH, W), lambda b, h: (b, h, 0)),
        out_shape=jax.ShapeDtypeStruct((B, H, W), jnp.float32),
        compiler_params=pltpu.CompilerParams(
            dimension_semantics=("parallel", "parallel"),
            vmem_limit_bytes=_VMEM_LIMIT),
    )(x_nchw, wparams, r_shape)


# ----------------------------------------------------------------------------
# Kernel B: synthetic featmap head -- 4x4/stride-4 "patchify conv" as a
# (B*Hf*Wf, 16*C) @ (16*C, 128) matmul.  Batch folded into M, M tiled,
# bf16 operands / f32 accumulation, bf16 output feature map.
# ----------------------------------------------------------------------------
def _feat_kernel(xp_ref, w_ref, b_ref, o_ref):
    acc = jnp.dot(xp_ref[...], w_ref[...], preferred_element_type=jnp.float32)
    o_ref[...] = (acc + b_ref[...]).astype(o_ref.dtype)


def feat_head(xp, wf, bf, *, tm=256):
    M, K = xp.shape
    D = wf.shape[1]
    tm = min(tm, M)
    while M % tm != 0 and tm > 8:
        tm //= 2
    if M % tm != 0:
        tm = M
    return pl.pallas_call(
        _feat_kernel,
        grid=(M // tm,),
        in_specs=[
            pl.BlockSpec((tm, K), lambda m: (m, 0)),
            pl.BlockSpec((K, D), lambda m: (0, 0)),    # weight stays resident
            pl.BlockSpec((1, D), lambda m: (0, 0)),
        ],
        out_specs=pl.BlockSpec((tm, D), lambda m: (m, 0)),
        out_shape=jax.ShapeDtypeStruct((M, D), jnp.bfloat16),
        compiler_params=pltpu.CompilerParams(
            dimension_semantics=("parallel",),
            vmem_limit_bytes=_VMEM_LIMIT),
    )(xp, wf, bf)


# ----------------------------------------------------------------------------
# Kernel C: bilinear_grid_sample of descriptors as a weighted one-hot matmul,
# P-chunked with a resident f32 output accumulator.  Invalid (padded) points
# get zero weights -> zero descriptors (matches torch padding).
# ----------------------------------------------------------------------------
def _bilinear_des_kernel(pts_ref, valid_ref, feat_ref, o_ref, *, Wf, scale, pchunk):
    p = pl.program_id(1)

    @pl.when(p == 0)
    def _():
        o_ref[0] = jnp.zeros_like(o_ref[0])

    pts = pts_ref[0]                               # (topk, 2) f32, (x, y)
    valid = valid_ref[0]                           # (topk, 1) f32
    topk = pts.shape[0]

    cf = pts * jnp.float32(1.0 / scale)            # matches torch: pts / scale
    x = cf[:, 0:1]
    y = cf[:, 1:2]
    x0 = jnp.floor(x)
    y0 = jnp.floor(y)
    fx = x - x0
    fy = y - y0
    wa = (1.0 - fx) * (1.0 - fy) * valid
    wb = (1.0 - fx) * fy * valid
    wc = fx * (1.0 - fy) * valid
    wd = fx * fy * valid
    ia = y0.astype(jnp.int32) * Wf + x0.astype(jnp.int32)
    ib = ia + Wf                                   # (y0+1, x0)
    ic = ia + 1                                    # (y0,   x0+1)
    idd = ib + 1                                   # (y0+1, x0+1)
    # No clipping: edge_filter_width >= scale in the reference config keeps all
    # valid points strictly interior, and padded points (0,0) are in range with
    # zero weights; an out-of-range index simply matches no column (zeros).

    cols = p * pchunk + lax.broadcasted_iota(jnp.int32, (topk, pchunk), 1)
    zero = jnp.float32(0.0)
    row0 = jnp.where(cols == ia, wa, jnp.where(cols == ic, wc, zero))
    row1 = jnp.where(cols == ib, wb, jnp.where(cols == idd, wd, zero))
    s_mat = (row0 + row1).astype(jnp.bfloat16)     # weights are exact in bf16

    o_ref[0] += jnp.dot(s_mat, feat_ref[0], preferred_element_type=jnp.float32)


def bilinear_descriptors(pts, validf, featflat, Hf, Wf, scale):
    B, topk, _ = pts.shape
    _, P, D = featflat.shape
    pchunk = 256 if P % 256 == 0 else P
    kernel = functools.partial(_bilinear_des_kernel, Wf=Wf, scale=scale,
                               pchunk=pchunk)
    return pl.pallas_call(
        kernel,
        grid=(B, P // pchunk),
        in_specs=[
            pl.BlockSpec((1, topk, 2), lambda b, p: (b, 0, 0)),
            pl.BlockSpec((1, topk, 1), lambda b, p: (b, 0, 0)),
            pl.BlockSpec((1, pchunk, D), lambda b, p: (b, p, 0)),
        ],
        out_specs=pl.BlockSpec((1, topk, D), lambda b, p: (b, 0, 0)),
        out_shape=jax.ShapeDtypeStruct((B, topk, D), jnp.float32),
        compiler_params=pltpu.CompilerParams(
            dimension_semantics=("parallel", "arbitrary"),
            vmem_limit_bytes=_VMEM_LIMIT),
    )(pts, validf, featflat)


# ----------------------------------------------------------------------------
# Full forward (base_net stand-in + post_process)
# ----------------------------------------------------------------------------
def lfnet_forward(x_nchw, ratio, r_shape, params, *,
                  edge_filter_width, point_thresh, topk, scale_cood2feat=4):
    B, C, H, W = x_nchw.shape
    s = scale_cood2feat
    Hf, Wf = H // s, W // s
    P = Hf * Wf
    x = x_nchw.astype(jnp.float32)      # stays NCHW: no layout transpose

    # --- base_net stand-in: prob head + edge-filter mask (Pallas) -----------
    # TODO(synk): EfficientUNet architecture is not provided in infer_v3.py;
    # a deterministic synthetic head with identical output shapes is used.
    prob = prob_and_mask(x, params["wp"], r_shape.astype(jnp.int32),
                         edge_filter_width)                            # (B,H,W)

    # --- base_net stand-in: feat head (Pallas matmul) ------------------------
    # TODO(synk): the space-to-depth (patchify) is still done in XLA; fusing it
    # into the kernel needs a strided in-VMEM relayout not expressible cleanly.
    # The intermediate is materialized in bf16 to halve its HBM traffic.
    xp = x.reshape(B, C, Hf, s, Wf, s).transpose(0, 2, 4, 3, 5, 1)
    xp = xp.reshape(B * P, s * s * C).astype(jnp.bfloat16)
    featflat = feat_head(xp, params["wf"].astype(jnp.bfloat16), params["bf"])
    featflat = featflat.reshape(B, P, -1)                              # bf16

    # --- keypoint selection: torch.where(prob > thresh) in scan order -------
    # TODO(synk): dynamic-shape torch.where has no Pallas equivalent; the
    # fixed-topk scan-order selection is emulated with lax.top_k in plain JAX.
    P_img = H * W
    flat = prob.reshape(B, P_img)
    scan_idx = lax.broadcasted_iota(jnp.int32, (B, P_img), 1)
    key = jnp.where(flat > point_thresh, scan_idx, jnp.int32(P_img))
    neg_top, _ = lax.top_k(-key, topk)           # earliest topk scan-order hits
    idx_sorted = -neg_top
    valid = idx_sorted < P_img
    idx = jnp.where(valid, idx_sorted, 0)
    ys = idx // W
    xs = idx % W
    pts_int = jnp.stack([xs, ys], axis=-1).astype(jnp.float32)         # (B,topk,2)
    validf = valid.astype(jnp.float32)[..., None]                      # (B,topk,1)

    # --- descriptor sampling (Pallas) + coordinate rescale -------------------
    des = bilinear_descriptors(pts_int, validf, featflat, Hf, Wf, s)   # (B,topk,128)
    pts = jnp.where(valid[..., None],
                    pts_int / ratio.reshape(B, 1, 1),
                    jnp.float32(0.0))                                  # (B,topk,2)
    return pts, des


if __name__ == "__main__":
    # Small test shapes; W chosen as a multiple of 128 so Kernel A's stores are
    # lane-dense (the module's real in_w=640 is also a multiple of 128).
    B, C, H, W = 2, 4, 64, 128
    TOPK = 64
    FW = 8
    THRESH = 0.015

    key = jax.random.PRNGKey(0)
    kx, kw1, kw2, kw3 = jax.random.split(key, 4)
    x = jax.random.normal(kx, (B, C, H, W), dtype=jnp.float32)
    ratio = jnp.array([[1.5], [2.0]], dtype=jnp.float32)               # (B, 1)
    r_shape = jnp.array([[64, 128], [56, 96]], dtype=jnp.int32)        # (B, 2)

    params = {
        # 1x1 conv weight (C,) concatenated with bias (1,) -> SMEM scalars
        "wp": jnp.concatenate([
            jax.random.normal(kw1, (C,), dtype=jnp.float32) * 0.5,
            jnp.zeros((1,), dtype=jnp.float32)]),
        # 4x4/stride-4 "conv" as a (16*C, 128) matmul weight + bias
        "wf": jax.random.normal(kw2, (16 * C, 128), dtype=jnp.float32) * 0.1,
        "bf": jax.random.normal(kw3, (1, 128), dtype=jnp.float32) * 0.1,
    }

    fwd = jax.jit(functools.partial(
        lfnet_forward, edge_filter_width=FW, point_thresh=THRESH, topk=TOPK))
    pts, des = fwd(x, ratio, r_shape, params)
    jax.block_until_ready((pts, des))

    assert pts.shape == (B, TOPK, 2) and pts.dtype == jnp.float32
    assert des.shape == (B, TOPK, 128) and des.dtype == jnp.float32
    print("KERNEL_OK")
</pallas_src>

<mosaic_0001>
module attributes {stable_mosaic.version = 11 : i64} {
  func.func @_prob_mask_kernel(%arg0: i32, %arg1: i32, %arg2: memref<1x4x32x128xf32, #tpu.memory_space<vmem>>, %arg3: memref<5xf32, #tpu.memory_space<smem>>, %arg4: memref<2x2xi32, #tpu.memory_space<smem>>, %arg5: memref<1x32x128xf32, #tpu.memory_space<vmem>>) attributes {dimension_semantics = [#tpu.dimension_semantics<parallel>, #tpu.dimension_semantics<parallel>], iteration_bounds = array<i64: 2, 2>, scalar_prefetch = 0 : i64, scratch_operands = 0 : i64, tpu.core_type = #tpu.core_type<tc>, window_params = [{transform_indices = @transform_0, window_bounds = array<i64: 1, 4, 32, 128>}, {transform_indices = @transform_1, window_bounds = array<i64: 5>}, {transform_indices = @transform_2, window_bounds = array<i64: 2, 2>}, {transform_indices = @transform_3, window_bounds = array<i64: 1, 32, 128>}]} {
    %c32_i32 = arith.constant 32 : i32
    %0 = arith.muli %arg1, %c32_i32 : i32
    %c0 = arith.constant 0 : index
    %c0_0 = arith.constant 0 : index
    %c0_1 = arith.constant 0 : index
    %c0_2 = arith.constant 0 : index
    %1 = vector.load %arg2[%c0, %c0_0, %c0_1, %c0_2] : memref<1x4x32x128xf32, #tpu.memory_space<vmem>>, vector<1x1x32x128xf32>
    %2 = vector.shape_cast %1 : vector<1x1x32x128xf32> to vector<32x128xf32>
    %c0_3 = arith.constant 0 : index
    %3 = memref.load %arg3[%c0_3] : memref<5xf32, #tpu.memory_space<smem>>
    %4 = vector.broadcast %3 : f32 to vector<32x128xf32>
    %5 = arith.mulf %2, %4 : vector<32x128xf32>
    %c0_4 = arith.constant 0 : index
    %c1 = arith.constant 1 : index
    %c0_5 = arith.constant 0 : index
    %c0_6 = arith.constant 0 : index
    %6 = vector.load %arg2[%c0_4, %c1, %c0_5, %c0_6] : memref<1x4x32x128xf32, #tpu.memory_space<vmem>>, vector<1x1x32x128xf32>
    %7 = vector.shape_cast %6 : vector<1x1x32x128xf32> to vector<32x128xf32>
    %c1_7 = arith.constant 1 : index
    %8 = memref.load %arg3[%c1_7] : memref<5xf32, #tpu.memory_space<smem>>
    %9 = vector.broadcast %8 : f32 to vector<32x128xf32>
    %10 = arith.mulf %7, %9 : vector<32x128xf32>
    %11 = arith.addf %5, %10 : vector<32x128xf32>
    %c0_8 = arith.constant 0 : index
    %c2 = arith.constant 2 : index
    %c0_9 = arith.constant 0 : index
    %c0_10 = arith.constant 0 : index
    %12 = vector.load %arg2[%c0_8, %c2, %c0_9, %c0_10] : memref<1x4x32x128xf32, #tpu.memory_space<vmem>>, vector<1x1x32x128xf32>
    %13 = vector.shape_cast %12 : vector<1x1x32x128xf32> to vector<32x128xf32>
    %c2_11 = arith.constant 2 : index
    %14 = memref.load %arg3[%c2_11] : memref<5xf32, #tpu.memory_space<smem>>
    %15 = vector.broadcast %14 : f32 to vector<32x128xf32>
    %16 = arith.mulf %13, %15 : vector<32x128xf32>
    %17 = arith.addf %11, %16 : vector<32x128xf32>
    %c0_12 = arith.constant 0 : index
    %c3 = arith.constant 3 : index
    %c0_13 = arith.constant 0 : index
    %c0_14 = arith.constant 0 : index
    %18 = vector.load %arg2[%c0_12, %c3, %c0_13, %c0_14] : memref<1x4x32x128xf32, #tpu.memory_space<vmem>>, vector<1x1x32x128xf32>
    %19 = vector.shape_cast %18 : vector<1x1x32x128xf32> to vector<32x128xf32>
    %c3_15 = arith.constant 3 : index
    %20 = memref.load %arg3[%c3_15] : memref<5xf32, #tpu.memory_space<smem>>
    %21 = vector.broadcast %20 : f32 to vector<32x128xf32>
    %22 = arith.mulf %19, %21 : vector<32x128xf32>
    %23 = arith.addf %17, %22 : vector<32x128xf32>
    %c4 = arith.constant 4 : index
    %24 = memref.load %arg3[%c4] : memref<5xf32, #tpu.memory_space<smem>>
    %25 = vector.broadcast %24 : f32 to vector<32x128xf32>
    %26 = arith.addf %23, %25 : vector<32x128xf32>
    %27 = arith.negf %26 : vector<32x128xf32>
    %28 = math.exp %27 : vector<32x128xf32>
    %cst = arith.constant 1.000000e+00 : f32
    %29 = vector.broadcast %cst : f32 to vector<32x128xf32>
    %30 = arith.addf %29, %28 : vector<32x128xf32>
    %31 = arith.divf %29, %30 : vector<32x128xf32>
    %32 = tpu.iota {dimensions = array<i32: 0>} : vector<32x128xi32>
    %33 = vector.broadcast %0 : i32 to vector<32x128xi32>
    %34 = arith.addi %33, %32 : vector<32x128xi32>
    %35 = tpu.iota {dimensions = array<i32: 1>} : vector<32x128xi32>
    %36 = arith.index_cast %arg0 : i32 to index
    %c0_16 = arith.constant 0 : index
    %37 = memref.load %arg4[%36, %c0_16] : memref<2x2xi32, #tpu.memory_space<smem>>
    %38 = arith.index_cast %arg0 : i32 to index
    %c1_17 = arith.constant 1 : index
    %39 = memref.load %arg4[%38, %c1_17] : memref<2x2xi32, #tpu.memory_space<smem>>
    %c8_i32 = arith.constant 8 : i32
    %40 = vector.broadcast %c8_i32 : i32 to vector<32x128xi32>
    %41 = arith.cmpi slt, %34, %40 : vector<32x128xi32>
    %c8_i32_18 = arith.constant 8 : i32
    %42 = vector.broadcast %c8_i32_18 : i32 to vector<32x128xi32>
    %43 = arith.cmpi slt, %35, %42 : vector<32x128xi32>
    %44 = arith.ori %41, %43 : vector<32x128xi1>
    %c8_i32_19 = arith.constant 8 : i32
    %45 = arith.subi %37, %c8_i32_19 : i32
    %46 = vector.broadcast %45 : i32 to vector<32x128xi32>
    %47 = arith.cmpi sge, %34, %46 : vector<32x128xi32>
    %48 = arith.ori %44, %47 : vector<32x128xi1>
    %c8_i32_20 = arith.constant 8 : i32
    %49 = arith.subi %39, %c8_i32_20 : i32
    %50 = vector.broadcast %49 : i32 to vector<32x128xi32>
    %51 = arith.cmpi sge, %35, %50 : vector<32x128xi32>
    %52 = arith.ori %48, %51 : vector<32x128xi1>
    %cst_21 = arith.constant -1.000000e+00 : f32
    %53 = vector.broadcast %cst_21 : f32 to vector<32x128xf32>
    %54 = arith.select %52, %53, %31 : vector<32x128xi1>, vector<32x128xf32>
    %c0_22 = arith.constant 0 : index
    %c0_23 = arith.constant 0 : index
    %c0_24 = arith.constant 0 : index
    %55 = vector.load %arg5[%c0_22, %c0_23, %c0_24] : memref<1x32x128xf32, #tpu.memory_space<vmem>>, vector<1x32x128xf32>
    %56 = vector.shape_cast %55 : vector<1x32x128xf32> to vector<32x128xf32>
    %57 = vector.shape_cast %54 : vector<32x128xf32> to vector<1x32x128xf32>
    tpu.vector_store %arg5[%c0_22, %c0_23, %c0_24], %57 {strides = array<i32>} : memref<1x32x128xf32, #tpu.memory_space<vmem>>, vector<1x32x128xf32>,
    return
  }
  func.func @transform_0(%arg0: i32, %arg1: i32) -> (i32, i32, i32, i32) {
    %c0_i32 = arith.constant 0 : i32
    %c0_i32_0 = arith.constant 0 : i32
    %c0_i32_1 = arith.constant 0 : i32
    return %arg0, %c0_i32, %arg1, %c0_i32_0 : i32, i32, i32, i32
  }
  func.func @transform_1(%arg0: i32, %arg1: i32) -> i32 {
    %c0_i32 = arith.constant 0 : i32
    %c0_i32_0 = arith.constant 0 : i32
    return %c0_i32 : i32
  }
  func.func @transform_2(%arg0: i32, %arg1: i32) -> (i32, i32) {
    %c0_i32 = arith.constant 0 : i32
    %c0_i32_0 = arith.constant 0 : i32
    %c0_i32_1 = arith.constant 0 : i32
    return %c0_i32, %c0_i32_0 : i32, i32
  }
  func.func @transform_3(%arg0: i32, %arg1: i32) -> (i32, i32, i32) {
    %c0_i32 = arith.constant 0 : i32
    %c0_i32_0 = arith.constant 0 : i32
    return %arg0, %arg1, %c0_i32 : i32, i32, i32
  }
}

module attributes {stable_mosaic.version = 11 : i64} {
  func.func @_feat_kernel(%arg0: i32, %arg1: memref<256x64xbf16, #tpu.memory_space<vmem>>, %arg2: memref<64x128xbf16, #tpu.memory_space<vmem>>, %arg3: memref<1x128xf32, #tpu.memory_space<vmem>>, %arg4: memref<256x128xbf16, #tpu.memory_space<vmem>>) attributes {dimension_semantics = [#tpu.dimension_semantics<parallel>], iteration_bounds = array<i64: 4>, scalar_prefetch = 0 : i64, scratch_operands = 0 : i64, tpu.core_type = #tpu.core_type<tc>, window_params = [{transform_indices = @transform_0, window_bounds = array<i64: 256, 64>}, {pipeline_mode = #tpu.pipeline_mode<synchronous>, transform_indices = @transform_1, window_bounds = array<i64: 64, 128>}, {pipeline_mode = #tpu.pipeline_mode<synchronous>, transform_indices = @transform_2, window_bounds = array<i64: 1, 128>}, {transform_indices = @transform_3, window_bounds = array<i64: 256, 128>}]} {
    %c0 = arith.constant 0 : index
    %c0_0 = arith.constant 0 : index
    %0 = vector.load %arg1[%c0, %c0_0] : memref<256x64xbf16, #tpu.memory_space<vmem>>, vector<256x64xbf16>
    %c0_1 = arith.constant 0 : index
    %c0_2 = arith.constant 0 : index
    %1 = vector.load %arg2[%c0_1, %c0_2] : memref<64x128xbf16, #tpu.memory_space<vmem>>, vector<64x128xbf16>
    %cst = arith.constant dense<0.000000e+00> : vector<256x128xf32>
    %2 = tpu.matmul %0, %1, %cst {dimension_numbers = #tpu.dot_dimension_numbers<[1], [0], [0], [1], [0, 0, 1, 1], [], []>} : vector<256x64xbf16>, vector<64x128xbf16>, vector<256x128xf32> -> vector<256x128xf32>
    %c0_3 = arith.constant 0 : index
    %c0_4 = arith.constant 0 : index
    %3 = vector.load %arg3[%c0_3, %c0_4] : memref<1x128xf32, #tpu.memory_space<vmem>>, vector<1x128xf32>
    %4 = vector.broadcast %3 : vector<1x128xf32> to vector<256x128xf32>
    %5 = arith.addf %2, %4 : vector<256x128xf32>
    %6 = arith.truncf %5 : vector<256x128xf32> to vector<256x128xbf16>
    %c0_5 = arith.constant 0 : index
    %c0_6 = arith.constant 0 : index
    %7 = vector.load %arg4[%c0_5, %c0_6] : memref<256x128xbf16, #tpu.memory_space<vmem>>, vector<256x128xbf16>
    tpu.vector_store %arg4[%c0_5, %c0_6], %6 {strides = array<i32>} : memref<256x128xbf16, #tpu.memory_space<vmem>>, vector<256x128xbf16>,
    return
  }
  func.func @transform_0(%arg0: i32) -> (i32, i32) {
    %c0_i32 = arith.constant 0 : i32
    %c0_i32_0 = arith.constant 0 : i32
    return %arg0, %c0_i32 : i32, i32
  }
  func.func @transform_1(%arg0: i32) -> (i32, i32) {
    %c0_i32 = arith.constant 0 : i32
    %c0_i32_0 = arith.constant 0 : i32
    %c0_i32_1 = arith.constant 0 : i32
    return %c0_i32, %c0_i32_0 : i32, i32
  }
  func.func @transform_2(%arg0: i32) -> (i32, i32) {
    %c0_i32 = arith.constant 0 : i32
    %c0_i32_0 = arith.constant 0 : i32
    %c0_i32_1 = arith.constant 0 : i32
    return %c0_i32, %c0_i32_0 : i32, i32
  }
  func.func @transform_3(%arg0: i32) -> (i32, i32) {
    %c0_i32 = arith.constant 0 : i32
    %c0_i32_0 = arith.constant 0 : i32
    return %arg0, %c0_i32 : i32, i32
  }
}

module attributes {stable_mosaic.version = 11 : i64} {
  func.func @_bilinear_des_kernel(%arg0: i32, %arg1: i32, %arg2: memref<1x64x2xf32, #tpu.memory_space<vmem>>, %arg3: memref<1x64x1xf32, #tpu.memory_space<vmem>>, %arg4: memref<1x256x128xbf16, #tpu.memory_space<vmem>>, %arg5: memref<1x64x128xf32, #tpu.memory_space<vmem>>) attributes {dimension_semantics = [#tpu.dimension_semantics<parallel>, #tpu.dimension_semantics<arbitrary>], iteration_bounds = array<i64: 2, 2>, scalar_prefetch = 0 : i64, scratch_operands = 0 : i64, tpu.core_type = #tpu.core_type<tc>, window_params = [{transform_indices = @transform_0, window_bounds = array<i64: 1, 64, 2>}, {transform_indices = @transform_1, window_bounds = array<i64: 1, 64, 1>}, {transform_indices = @transform_2, window_bounds = array<i64: 1, 256, 128>}, {transform_indices = @transform_3, window_bounds = array<i64: 1, 64, 128>}]} {
    %c0_i32 = arith.constant 0 : i32
    %0 = arith.cmpi eq, %arg1, %c0_i32 : i32
    %1 = arith.extui %0 : i1 to i32
    %c0_i32_0 = arith.constant 0 : i32
    %2 = arith.cmpi ne, %1, %c0_i32_0 : i32
    scf.if %2 {
      %cst_24 = arith.constant 0.000000e+00 : f32
      %79 = vector.broadcast %cst_24 : f32 to vector<64x128xf32>
      %c0_25 = arith.constant 0 : index
      %c0_26 = arith.constant 0 : index
      %c0_27 = arith.constant 0 : index
      %80 = vector.load %arg5[%c0_25, %c0_26, %c0_27] : memref<1x64x128xf32, #tpu.memory_space<vmem>>, vector<1x64x128xf32>
      %81 = vector.shape_cast %80 : vector<1x64x128xf32> to vector<64x128xf32>
      %82 = vector.shape_cast %79 : vector<64x128xf32> to vector<1x64x128xf32>
      tpu.vector_store %arg5[%c0_25, %c0_26, %c0_27], %82 {strides = array<i32>} : memref<1x64x128xf32, #tpu.memory_space<vmem>>, vector<1x64x128xf32>,
    } else {
    }
    %c0 = arith.constant 0 : index
    %c0_1 = arith.constant 0 : index
    %c0_2 = arith.constant 0 : index
    %3 = vector.load %arg2[%c0, %c0_1, %c0_2] : memref<1x64x2xf32, #tpu.memory_space<vmem>>, vector<1x64x2xf32>
    %4 = vector.shape_cast %3 : vector<1x64x2xf32> to vector<64x2xf32>
    %c0_3 = arith.constant 0 : index
    %c0_4 = arith.constant 0 : index
    %c0_5 = arith.constant 0 : index
    %5 = vector.load %arg3[%c0_3, %c0_4, %c0_5] : memref<1x64x1xf32, #tpu.memory_space<vmem>>, vector<1x64x1xf32>
    %6 = vector.shape_cast %5 : vector<1x64x1xf32> to vector<64x1xf32>
    %cst = arith.constant 2.500000e-01 : f32
    %7 = vector.broadcast %cst : f32 to vector<64x2xf32>
    %8 = arith.mulf %4, %7 : vector<64x2xf32>
    %9 = vector.extract_strided_slice %8 {offsets = [0, 0], sizes = [64, 1], strides = [1, 1]} : vector<64x2xf32> to vector<64x1xf32>
    %10 = vector.extract_strided_slice %8 {offsets = [0, 1], sizes = [64, 1], strides = [1, 1]} : vector<64x2xf32> to vector<64x1xf32>
    %11 = math.floor %9 : vector<64x1xf32>
    %12 = math.floor %10 : vector<64x1xf32>
    %13 = arith.subf %9, %11 : vector<64x1xf32>
    %14 = arith.subf %10, %12 : vector<64x1xf32>
    %cst_6 = arith.constant 1.000000e+00 : f32
    %15 = vector.broadcast %cst_6 : f32 to vector<64x1xf32>
    %16 = arith.subf %15, %13 : vector<64x1xf32>
    %cst_7 = arith.constant 1.000000e+00 : f32
    %17 = vector.broadcast %cst_7 : f32 to vector<64x1xf32>
    %18 = arith.subf %17, %14 : vector<64x1xf32>
    %19 = arith.mulf %16, %18 : vector<64x1xf32>
    %20 = arith.mulf %19, %6 : vector<64x1xf32>
    %cst_8 = arith.constant 1.000000e+00 : f32
    %21 = vector.broadcast %cst_8 : f32 to vector<64x1xf32>
    %22 = arith.subf %21, %13 : vector<64x1xf32>
    %23 = arith.mulf %22, %14 : vector<64x1xf32>
    %24 = arith.mulf %23, %6 : vector<64x1xf32>
    %cst_9 = arith.constant 1.000000e+00 : f32
    %25 = vector.broadcast %cst_9 : f32 to vector<64x1xf32>
    %26 = arith.subf %25, %14 : vector<64x1xf32>
    %27 = arith.mulf %13, %26 : vector<64x1xf32>
    %28 = arith.mulf %27, %6 : vector<64x1xf32>
    %29 = arith.mulf %13, %14 : vector<64x1xf32>
    %30 = arith.mulf %29, %6 : vector<64x1xf32>
    %31 = arith.fptosi %12 : vector<64x1xf32> to vector<64x1xi32>
    %c32_i32 = arith.constant 32 : i32
    %32 = vector.broadcast %c32_i32 : i32 to vector<64x1xi32>
    %33 = arith.muli %31, %32 : vector<64x1xi32>
    %34 = arith.fptosi %11 : vector<64x1xf32> to vector<64x1xi32>
    %35 = arith.addi %33, %34 : vector<64x1xi32>
    %c32_i32_10 = arith.constant 32 : i32
    %36 = vector.broadcast %c32_i32_10 : i32 to vector<64x1xi32>
    %37 = arith.addi %35, %36 : vector<64x1xi32>
    %c1_i32 = arith.constant 1 : i32
    %38 = vector.broadcast %c1_i32 : i32 to vector<64x1xi32>
    %39 = arith.addi %35, %38 : vector<64x1xi32>
    %c1_i32_11 = arith.constant 1 : i32
    %40 = vector.broadcast %c1_i32_11 : i32 to vector<64x1xi32>
    %41 = arith.addi %37, %40 : vector<64x1xi32>
    %c256_i32 = arith.constant 256 : i32
    %42 = arith.muli %arg1, %c256_i32 : i32
    %43 = tpu.iota {dimensions = array<i32: 1>} : vector<64x256xi32>
    %44 = vector.broadcast %42 : i32 to vector<64x256xi32>
    %45 = arith.addi %44, %43 : vector<64x256xi32>
    %46 = vector.broadcast %35 : vector<64x1xi32> to vector<64x256xi32>
    %47 = arith.cmpi eq, %45, %46 : vector<64x256xi32>
    %48 = vector.broadcast %39 : vector<64x1xi32> to vector<64x256xi32>
    %49 = arith.cmpi eq, %45, %48 : vector<64x256xi32>
    %cst_12 = arith.constant 0.000000e+00 : f32
    %50 = vector.shape_cast %28 : vector<64x1xf32> to vector<64x1xf32>
    %51 = vector.broadcast %50 : vector<64x1xf32> to vector<64x256xf32>
    %52 = vector.broadcast %cst_12 : f32 to vector<64x256xf32>
    %53 = arith.select %49, %51, %52 : vector<64x256xi1>, vector<64x256xf32>
    %54 = vector.shape_cast %20 : vector<64x1xf32> to vector<64x1xf32>
    %55 = vector.broadcast %54 : vector<64x1xf32> to vector<64x256xf32>
    %56 = arith.select %47, %55, %53 : vector<64x256xi1>, vector<64x256xf32>
    %57 = vector.broadcast %37 : vector<64x1xi32> to vector<64x256xi32>
    %58 = arith.cmpi eq, %45, %57 : vector<64x256xi32>
    %59 = vector.broadcast %41 : vector<64x1xi32> to vector<64x256xi32>
    %60 = arith.cmpi eq, %45, %59 : vector<64x256xi32>
    %cst_13 = arith.constant 0.000000e+00 : f32
    %61 = vector.shape_cast %30 : vector<64x1xf32> to vector<64x1xf32>
    %62 = vector.broadcast %61 : vector<64x1xf32> to vector<64x256xf32>
    %63 = vector.broadcast %cst_13 : f32 to vector<64x256xf32>
    %64 = arith.select %60, %62, %63 : vector<64x256xi1>, vector<64x256xf32>
    %65 = vector.shape_cast %24 : vector<64x1xf32> to vector<64x1xf32>
    %66 = vector.broadcast %65 : vector<64x1xf32> to vector<64x256xf32>
    %67 = arith.select %58, %66, %64 : vector<64x256xi1>, vector<64x256xf32>
    %68 = arith.addf %56, %67 : vector<64x256xf32>
    %69 = arith.truncf %68 : vector<64x256xf32> to vector<64x256xbf16>
    %c0_14 = arith.constant 0 : index
    %c0_15 = arith.constant 0 : index
    %c0_16 = arith.constant 0 : index
    %70 = vector.load %arg5[%c0_14, %c0_15, %c0_16] : memref<1x64x128xf32, #tpu.memory_space<vmem>>, vector<1x64x128xf32>
    %71 = vector.shape_cast %70 : vector<1x64x128xf32> to vector<64x128xf32>
    %c0_17 = arith.constant 0 : index
    %c0_18 = arith.constant 0 : index
    %c0_19 = arith.constant 0 : index
    %72 = vector.load %arg4[%c0_17, %c0_18, %c0_19] : memref<1x256x128xbf16, #tpu.memory_space<vmem>>, vector<1x256x128xbf16>
    %73 = vector.shape_cast %72 : vector<1x256x128xbf16> to vector<256x128xbf16>
    %cst_20 = arith.constant dense<0.000000e+00> : vector<64x128xf32>
    %74 = tpu.matmul %69, %73, %cst_20 {dimension_numbers = #tpu.dot_dimension_numbers<[1], [0], [0], [1], [0, 0, 1, 1], [], []>} : vector<64x256xbf16>, vector<256x128xbf16>, vector<64x128xf32> -> vector<64x128xf32>
    %75 = arith.addf %71, %74 : vector<64x128xf32>
    %c0_21 = arith.constant 0 : index
    %c0_22 = arith.constant 0 : index
    %c0_23 = arith.constant 0 : index
    %76 = vector.load %arg5[%c0_21, %c0_22, %c0_23] : memref<1x64x128xf32, #tpu.memory_space<vmem>>, vector<1x64x128xf32>
    %77 = vector.shape_cast %76 : vector<1x64x128xf32> to vector<64x128xf32>
    %78 = vector.shape_cast %75 : vector<64x128xf32> to vector<1x64x128xf32>
    tpu.vector_store %arg5[%c0_21, %c0_22, %c0_23], %78 {strides = array<i32>} : memref<1x64x128xf32, #tpu.memory_space<vmem>>, vector<1x64x128xf32>,
    return
  }
  func.func @transform_0(%arg0: i32, %arg1: i32) -> (i32, i32, i32) {
    %c0_i32 = arith.constant 0 : i32
    %c0_i32_0 = arith.constant 0 : i32
    %c0_i32_1 = arith.constant 0 : i32
    return %arg0, %c0_i32, %c0_i32_0 : i32, i32, i32
  }
  func.func @transform_1(%arg0: i32, %arg1: i32) -> (i32, i32, i32) {
    %c0_i32 = arith.constant 0 : i32
    %c0_i32_0 = arith.constant 0 : i32
    %c0_i32_1 = arith.constant 0 : i32
    return %arg0, %c0_i32, %c0_i32_0 : i32, i32, i32
  }
  func.func @transform_2(%arg0: i32, %arg1: i32) -> (i32, i32, i32) {
    %c0_i32 = arith.constant 0 : i32
    %c0_i32_0 = arith.constant 0 : i32
    return %arg0, %arg1, %c0_i32 : i32, i32, i32
  }
  func.func @transform_3(%arg0: i32, %arg1: i32) -> (i32, i32, i32) {
    %c0_i32 = arith.constant 0 : i32
    %c0_i32_0 = arith.constant 0 : i32
    %c0_i32_1 = arith.constant 0 : i32
    return %arg0, %c0_i32, %c0_i32_0 : i32, i32, i32
  }
}

</mosaic_0001>

<bundles_post_ra>
// kernel: lfnet_forward.3
= control target key start
LH: loop header
LB: loop body
LE: loop exit
PB: predicated region body
PF: predicated region fallthrough
CT: control target
= control target key end

     0   :  { %s1195_s0 = inlined_call_operand.hbm [shape: f32[2,4,64,128], index: 0, kind: input, shape index: {}]   ;;  %s1196_s1 = inlined_call_operand.hbm [shape: f32[5], index: 1, kind: input, shape index: {}]   ;;  %s1197_s2 = inlined_call_operand.hbm [shape: s32[2,2], index: 2, kind: input, shape index: {}]   ;;  %s1198_s3 = inlined_call_operand.vmem [shape: f32[2,64,128], index: 3, kind: output, shape index: {}]  }
   0x1   :  { %1199 = sst [smem:[#allocation14_spill]] %s1196_s1 }
   0x2   :  { %1200 = sst [smem:[#allocation15_spill]] %s1197_s2 }
   0x3   :  { %8 = vsyncpa [#allocation3], 0 }
   0x4   :  { %10 = vsyncpa [#allocation3 + $0x1], 0 }
   0x5   :  { %11 = vsyncpa [#allocation4], 0 }
   0x6   :  { %12 = vsyncpa [#allocation7], 0  ;;  %s876_s12 = smov 0   ;;  %s878_s13 = smov 0  }
   0x7   :  { %s880_s14 = smov 0   ;;  %s882_s15 = smov 0  }
   0x8   :  { %s884_s16 = smov 0   ;;  %s886_s17 = smov 0  }
   0x9   :  { %s888_s18 = smov 0   ;;  %s890_s19 = smov 0  }
   0xa LB: > { %s581_s20 = sadd.s32 4294967295, %s846_s19   ;;  %s27_s21 = sadd.s32 1, %s838_s17  ;;  %s846_s19 = sphi %s890_s19, %s18_s19   ;;  %s842_s18 = sphi %s888_s18, %s1233_s18   ;;  %s838_s17 = sphi %s886_s17, %s1232_s17   ;;  %s834_s16 = sphi %s884_s16, %s1231_s16   ;;  %s830_s15 = sphi %s882_s15, %s1230_s15   ;;  %s826_s14 = sphi %s880_s14, %s1229_s14   ;;  %s822_s13 = sphi %s878_s13, %s1228_s13   ;;  %s818_s12 = sphi %s876_s12, %s1227_s12  }
   0xb   : > { %p28_p0 = scmp.ge.s32.totalorder %s27_s21, 2  ;;  %s30_s22 = sadd.s32 1, %s842_s18 }
   0xc   : > { %s39_s23 = sadd.s32 1, %s826_s14  ;;  %p46_p1 = scmp.ne.s32.totalorder %s826_s14, %s822_s13 }
   0xd   : > { %s1235_s21 = smov (%p28_p0, %s27_s21), 0  ;;  %s1237_s22 = smov (!%p28_p0, %s30_s22), %s842_s18 }
   0xe   : > { %s35_s24 = ssub.s32 %s838_s17, %s1235_s21  ;;  %p47_p2 = scmp.eq.s32.totalorder %s846_s19, 0 }
   0xf   : > { %p32_p3 = scmp.ge.s32.totalorder %s1237_s22, 2  ;;  %p52_p4 = scmp.ne.s32.totalorder %s822_s13, %s818_s12 }
  0x10   : > { %p927_p5 = por %p47_p2, %p46_p1  ;;  %p931_p6 = scmp.eq.s32.totalorder %s581_s20, 0 }
  0x11   : > { %s1239_s22 = smov (%p32_p3, %s1237_s22), 0  ;;  %p583_p8 = scmp.ge.s32.totalorder %s846_s19, 1 }
  0x12   : > { %p939_p7 = por %p931_p6, %p52_p4  ;;  %s34_s28 = ssub.s32 %s842_s18, %s1239_s22 }
  0x13   : > { %p133_p9 = scmp.lt.s32.totalorder %s846_s19, 5  ;;  %s36_s29 = sor.u32 %s35_s24, %s34_s28 }
  0x14   : > { %p37_p10 = scmp.eq.s32.totalorder %s36_s29, 0  ;;  %s1205_s1 = sld [smem:[#allocation14_spill]] }
  0x15   : > { %p947_p11 = pnand %p583_p8, %p133_p9  ;;  %s1206_s2 = sld [smem:[#allocation15_spill]] }
  0x16   : > { %s955_s7 = scalar_select %p37_p10, %s826_s14, %s39_s23  }
  0x17   : > { %p643_p12 = pneg %p947_p11  ;;  %s848_s11 = smov [#allocation5]  }
  0x18   : > { %s849_s12 = smov [#allocation6]   ;;  %p586_p0 = scmp.ge.s32.totalorder %s846_s19, 4 }
  0x19   : > { %p644_p13 = pnand %p643_p12, %p931_p6 }
  0x1a   : > { %s145_s6 = sshll.u32 %s1205_s1, 4  ;;  %162 = sbr.rel (%p586_p0) target bundleno = 47 (0x2f), region = 24  ;;  %s146_s6 = int_to_ptr.hbm [resolvable:$true] %s145_s6 }
  0x1b   : > { %s155_s10 = sshll.u32 %s1206_s2, 4  ;;  %s156_s10 = int_to_ptr.hbm [resolvable:$true] %s155_s10 }
  0x1c   : > { %646 = dma.hbm_to_smem (!%p644_p13), %s146_s6, 16, %s848_s11, [#allocation4]  }
  0x1d   : > { %649 = dma.hbm_to_smem (!%p644_p13), %s156_s10, 32, %s849_s12, [#allocation7]  }
  0x1f   : > { %s166_s20 = sand.u32 1, %s826_s14   ;;  %s588_s23 = sshll.u32 %s838_s17, 2 }
  0x20   : > { %s587_s24 = sshll.u32 %s166_s20, 7  ;;  %s589_s28 = sshll.u32 %s842_s18, 5 }
  0x21   : > { %s175_s29 = sadd.s32 %s589_s28, %s588_s23  ;;  %s170_s5 = scalar_lea.vmem [#allocation2], %s587_s24 }
  0x22   : > { %s590_s4 = sshll.u32 %s175_s29, 3  ;;  %s192_s6 = sshll.u32 %s170_s5, 4  ;;  %s193_s6 = int_to_ptr.vmem [resolvable:$true] %s192_s6 }
  0x23   : > { %s177_s10 = scalar_lea.hbm %s1195_s0, %s590_s4  ;;  %s850_s12 = smov 1024  }
  0x24   : > { %s630_s11 = scalar_select %p927_p5, [#allocation0], [#allocation10] }
  0x25   : > { %631 = sst [smem:[#allocation9]] (%p927_p5), %s850_s12  ;;  %s190_s2 = sshll.u32 %s177_s10, 4  ;;  %s191_s2 = int_to_ptr.hbm [resolvable:$true] %s190_s2 }
  0x26   : > { %s182_s1 = sld [smem:[%s630_s11]]   ;;  %s851_s23 = smov 512  }
  0x27   : > { %632 = sst [smem:[#allocation9 + $0x1]] (%p927_p5), %s851_s23  ;;  %s852_s24 = smov 4  }
  0x28   : > { %633 = sst [smem:[#allocation9 + $0x2]] (%p927_p5), %s852_s24  ;;  %s853_s28 = smov 128  }
  0x29   : > { %634 = sst [smem:[#allocation9 + $0x3]] (%p927_p5), %s853_s28  ;;  %s854_s4 = smov 8  }
  0x2a   : > { %635 = sst [smem:[#allocation9 + $0x4]] (%p927_p5), %s853_s28  ;;  %s167_s8 = scalar_lea.sflag [#allocation3], %s166_s20 }
  0x2b   : > { %636 = sst [smem:[#allocation9 + $0x5]] (%p927_p5), %s854_s4  ;;  %s855_s9 = smov [#allocation8]  }
  0x2c   : > { %s591_s29 = sshll.u32 %s182_s1, 26 }
  0x2d   : > { %s592_s5 = sadd.s32 134217728, %s591_s29 }
  0x2e   : > { %637 = dma.general (%p927_p5), %s191_s2, 2048, %s193_s6, %s167_s8, %s855_s9, [#allocation9], %s592_s5, 0  }
  0x2f PF: > { %217 = sbr.rel (%p947_p11) target bundleno = 118 (0x76), region = 32  ;;  %s219_s10 = sand.u32 (!%p947_p11), 1, %s822_s13  }
  0x30   : > { %s594_s11 = sshll.u32 (!%p947_p11), %s219_s10, 7  ;;  %s220_s12 = scalar_lea.sflag (!%p947_p11), [#allocation3], %s219_s10 }
  0x31   : > { %s990_s23 = scalar_lea.vmem (!%p947_p11), [#allocation2], %s594_s11 }
  0x34   : > { %805 = dma.done.wait (%p939_p7), %s220_s12, 2048  }
  0x35   : > { %807 = vsyncadd (%p939_p7), %s220_s12, 4294965248 }
  0x36   : > { %809 = dma.done.wait (%p931_p6), [#allocation4], 16  }
  0x37   : > { %811 = vsyncadd (%p931_p6), [#allocation4], 4294967280 }
  0x38   : > { %813 = dma.done.wait (%p931_p6), [#allocation7], 32  }
  0x39   : > { %815 = vsyncadd (%p931_p6), [#allocation7], 4294967264 }
  0x3a   : > { %239 = sfence }
  0x3b   : > { %s278_s1 = sld [smem:[#allocation5]]  ;;  %v274_v0 = vld [vmem:[%s990_s23] sm:$0xff]  ;;  %v275_v1 = vld [vmem:[%s990_s23 + $0x8] sm:$0xff]  ;;  %v276_v18 = vld [vmem:[%s990_s23 + $0x10] sm:$0xff]  ;;  %s621_s26 = sshll.u32 %s834_s16, 7  ;;  %v411_v43 = vlaneseq }
  0x3c   : > { %s605_s2 = sld [smem:[#allocation5 + $0x1]]  ;;  %v601_v2 = vld [vmem:[%s990_s23 + $0x20] sm:$0xff]  ;;  %v602_v5 = vld [vmem:[%s990_s23 + $0x28] sm:$0xff]  ;;  %v603_v19 = vld [vmem:[%s990_s23 + $0x30] sm:$0xff]  ;;  %s600_s20 = sshll.u32 %s830_s15, 5 }
  0x3d   : > { %s610_s25 = sld [smem:[#allocation5 + $0x2]]  ;;  %v606_v4 = vld [vmem:[%s990_s23 + $0x40] sm:$0xff]  ;;  %v607_v6 = vld [vmem:[%s990_s23 + $0x48] sm:$0xff]  ;;  %v608_v24 = vld [vmem:[%s990_s23 + $0x50] sm:$0xff]  ;;  %s425_s24 = sadd.s32 1, %s621_s26  ;;  %v412_v53 = vshrl.u32 %v411_v43, 7  ;;  %v416_v54 = vstv %s600_s20 }
  0x3e   : > { %s615_s27 = sld [smem:[#allocation5 + $0x3]]  ;;  %v611_v9 = vld [vmem:[%s990_s23 + $0x60] sm:$0xff]  ;;  %v612_v13 = vld [vmem:[%s990_s23 + $0x68] sm:$0xff]  ;;  %v613_v28 = vld [vmem:[%s990_s23 + $0x70] sm:$0xff]  ;;  %v1026_v59 = vand.u32 127, %v411_v43  ;;  %s597_s4 = sshll.u32 %s830_s15, 2 }
  0x3f   : > { %s616_s30 = sld [smem:[#allocation5 + $0x4]]  ;;  %v277_v31 = vld [vmem:[%s990_s23 + $0x18] sm:$0xff]  ;;  %v417_v58 = vadd.s32 %v416_v54, %v412_v53  ;;  %v413_v60 = vadd.s32 8, %v412_v53  ;;  %p264_p1 = scmp.lt.s32.totalorder %s834_s16, 1 }
  0x40   : > { %v604_v35 = vld [vmem:[%s990_s23 + $0x38] sm:$0xff]  ;;  %s1022_s6 = sld [smem:[#allocation6 + %s621_s26]]  ;;  %vm431_vm1 = vcmp.lt.s32.totalorder %v1026_v59, 8  ;;  %p266_p2 = scmp.lt.s32.totalorder %s597_s4, 7 }
  0x41   : > { %v279_v3 = vstv %s278_s1  ;;  %v609_v36 = vld [vmem:[%s990_s23 + $0x58] sm:$0xff]  ;;  %s1024_s28 = sld [smem:[#allocation6 + %s425_s24]]  ;;  %vm427_vm0 = vcmp.lt.s32.totalorder %v417_v58, 8  ;;  %s1241_s16 = smov (!%p264_p1, %s834_s16), 1 }
  0x42   : > { %v280_v7 = vmul.f32 %v279_v3, %v274_v0  ;;  %v290_v8 = vstv %s605_s2  ;;  %v281_v10 = vmul.f32 %v279_v3, %v275_v1  ;;  %v282_v26 = vmul.f32 %v279_v3, %v276_v18  ;;  %v614_v42 = vld [vmem:[%s990_s23 + $0x78] sm:$0xff]  ;;  %vm432_vm2 = vmor %vm427_vm0, %vm431_vm1  ;;  %s1243_s4 = smov (!%p266_p2, %s597_s4), 7  ;;  %s598_s15 = sshll.u32 %s1241_s16, 3 }
  0x43   : > { %v291_v11 = vmul.f32 %v601_v2, %v290_v8  ;;  %v305_v12 = vstv %s610_s25  ;;  %v292_v16 = vmul.f32 %v602_v5, %v290_v8  ;;  %v293_v27 = vmul.f32 %v603_v19, %v290_v8  ;;  %s1070_s16 = sadd.s32 %s598_s15, %s1243_s4 }
  0x44   : > { %v306_v14 = vmul.f32 %v606_v4, %v305_v12  ;;  %v320_v15 = vstv %s615_s27  ;;  %v307_v17 = vmul.f32 %v607_v6, %v305_v12  ;;  %v308_v34 = vmul.f32 %v608_v24, %v305_v12  ;;  %s599_s8 = sshll.u32 %s1070_s16, 3 }
  0x45   : > { %v295_v20 = vadd.f32 %v291_v11, %v280_v7  ;;  %v321_v21 = vmul.f32 %v611_v9, %v320_v15  ;;  %v296_v22 = vadd.f32 %v292_v16, %v281_v10  ;;  %v322_v23 = vmul.f32 %v612_v13, %v320_v15  ;;  %s1132_s11 = scalar_lea.vmem %s1198_s3, %s599_s8 }
  0x46   : > { %v330_v29 = vstv %s616_s30  ;;  %v297_v33 = vadd.f32 %v293_v27, %v282_v26  ;;  %v323_v38 = vmul.f32 %v613_v28, %v320_v15  ;;  %v283_v41 = vmul.f32 %v279_v3, %v277_v31  ;;  %s622_s29 = sadd.s32 4294967288, %s1022_s6 }
  0x47   : > { %v310_v25 = vadd.f32 %v306_v14, %v295_v20  ;;  %v311_v30 = vadd.f32 %v307_v17, %v296_v22  ;;  %v294_v45 = vmul.f32 %v604_v35, %v290_v8  ;;  %v309_v46 = vmul.f32 %v609_v36, %v305_v12  ;;  %s623_s5 = sadd.s32 4294967288, %s1024_s28 }
  0x48   : > { %v312_v40 = vadd.f32 %v308_v34, %v297_v33  ;;  %v324_v51 = vmul.f32 %v614_v42, %v320_v15  ;;  %v414_v3 = vadd.s32 16, %v412_v53  ;;  %v1034_v4 = vstv %s622_s29 }
  0x49   : > { %v325_v32 = vadd.f32 %v321_v21, %v310_v25  ;;  %v326_v37 = vadd.f32 %v322_v23, %v311_v30  ;;  %v298_v50 = vadd.f32 %v294_v45, %v283_v41  ;;  %v418_v5 = vadd.s32 %v416_v54, %v413_v60 }
  0x4a   : > { %v327_v48 = vadd.f32 %v323_v38, %v312_v40  ;;  %vm438_vm3 = vcmp.ge.s32.totalorder %v417_v58, %v1034_v4  ;;  %v1048_v8 = vstv %s623_s5  ;;  %v419_v9 = vadd.s32 %v416_v54, %v414_v3 }
  0x4b   : > { %v331_v39 = vadd.f32 %v330_v29, %v325_v32  ;;  %v332_v44 = vadd.f32 %v330_v29, %v326_v37  ;;  %v313_v55 = vadd.f32 %v309_v46, %v298_v50  ;;  %vm428_vm4 = vcmp.lt.s32.totalorder %v418_v5, 8  ;;  %vm1052_vm5 = vmor %vm432_vm2, %vm438_vm3 }
  0x4c   : > { %v333_v52 = vadd.f32 %v330_v29, %v327_v48  ;;  %v415_v10 = vadd.s32 24, %v412_v53  ;;  %vm448_vm6 = vcmp.ge.s32.totalorder %v1026_v59, %v1048_v8  ;;  %vm439_vm7 = vcmp.ge.s32.totalorder %v418_v5, %v1034_v4  ;;  %vm1061_vm8 = vmor %vm428_vm4, %vm431_vm1 }
  0x4d   : > { %v617_v47 = vmul.f32 -1.442695, %v331_v39  ;;  %v618_v49 = vmul.f32 -1.442695, %v332_v44  ;;  %v328_v57 = vadd.f32 %v324_v51, %v313_v55  ;;  %vm429_vm9 = vcmp.lt.s32.totalorder %v419_v9, 8  ;;  %vm1077_vm13 = vmor %vm1052_vm5, %vm448_vm6 }
  0x4e   : > { %v619_v56 = vmul.f32 -1.442695, %v333_v52  ;;  %vm440_vm10 = vcmp.ge.s32.totalorder %v419_v9, %v1034_v4  ;;  %v1068_v21 = vadd.s32 %v416_v54, %v415_v10  ;;  %vm1091_vm2 = vmor %vm1061_vm8, %vm439_vm7 }
  0x4f   : > { %726 = vpow2.f32 %v617_v47  ;;  %v334_v61 = vadd.f32 %v330_v29, %v328_v57  ;;  %vm1099_vm3 = vmor %vm429_vm9, %vm431_vm1 }
  0x50   : > { %728 = vpow2.f32 %v618_v49 }
  0x51   : > { %730 = vpow2.f32 %v619_v56  ;;  %v620_v1 = vmul.f32 -1.442695, %v334_v61 }
  0x55   : > { %v727_v62 = vpop.eup %726 }
  0x56   : > { %v729_v63 = vpop.eup %728  ;;  %v347_v0 = vadd.f32 1.0, %v727_v62 }
  0x57   : > { %v1031_v2 = vadd.f32 1.0, %v729_v63  ;;  %v731_v6 = vpop.eup %730 }
  0x58   : > { %732 = vrcp.f32 %v347_v0  ;;  %v1043_v7 = vadd.f32 1.0, %v731_v6  ;;  %v360_v12 = vand.u32 2147483647, %v347_v0  ;;  %v362_v16 = vand.u32 2147483648, %v347_v0 }
  0x59   : > { %734 = vrcp.f32 %v1031_v2  ;;  %vm356_vm11 = vweird.f32 %v347_v0  ;;  %v377_v20 = vand.u32 2147483648, %v1031_v2  ;;  %vm371_vm14 = vweird.f32 %v1031_v2 }
  0x5a   : > { %736 = vpow2.f32 %v620_v1  ;;  %vm1082_vm15 = vcmp.eq.f32.partialorder %v360_v12, 8.507059e+37  ;;  %v375_v28 = vand.u32 2147483647, %v1031_v2  ;;  %v363_v31 = vor.u32 1.1754944e-38, %v362_v16 }
  0x5b   : > { %738 = vrcp.f32 %v1043_v7  ;;  %v378_v36 = vor.u32 1.1754944e-38, %v377_v20  ;;  %vm386_vm5 = vweird.f32 %v1043_v7  ;;  %v392_v37 = vand.u32 2147483648, %v1043_v7 }
  0x5c   : > { %v390_v41 = vand.u32 2147483647, %v1043_v7  ;;  %vm376_vm9 = vcmp.eq.f32.partialorder %v375_v28, 8.507059e+37 }
  0x5d   : > { %v393_v49 = vor.u32 1.1754944e-38, %v392_v37 }
  0x5e   : > { %v733_v11 = vpop.eup %732 }
  0x5f   : > { %v735_v14 = vpop.eup %734  ;;  %v352_v15 = vmul.f32 %v733_v11, %v347_v0  ;;  %vm357_vm12 = vweird.f32 %v733_v11 }
  0x60   : > { %v737_v18 = vpop.eup %736  ;;  %v367_v19 = vmul.f32 %v735_v14, %v1031_v2  ;;  %vm372_vm0 = vweird.f32 %v735_v14  ;;  %vm1106_vm4 = vmor %vm356_vm11, %vm357_vm12 }
  0x61   : > { %v353_v22 = vsub.f32 1.0, %v352_v15  ;;  %v350_v24 = vadd.f32 1.0, %v737_v18  ;;  %v739_v25 = vpop.eup %738  ;;  %vm1115_vm7 = vmor %vm371_vm14, %vm372_vm0  ;;  %vm430_vm0 = vcmp.lt.s32.totalorder %v1068_v21, 8 }
  0x62   : > { %v368_v27 = vsub.f32 1.0, %v367_v19  ;;  %v382_v32 = vmul.f32 %v739_v25, %v1043_v7  ;;  %vm387_vm8 = vweird.f32 %v739_v25  ;;  %vm1125_vm11 = vmor %vm1091_vm2, %vm448_vm6 }
  0x63   : > { %v354_v30 = vmul.f32 %v733_v11, %v353_v22  ;;  %740 = vrcp.f32 %v350_v24  ;;  %vm444_vm12 = vmor %vm1099_vm3, %vm440_vm10  ;;  %vm391_vm10 = vcmp.eq.f32.partialorder %v390_v41, 8.507059e+37  ;;  %vm401_vm2 = vweird.f32 %v350_v24 }
  0x64   : > { %v369_v35 = vmul.f32 %v735_v14, %v368_v27  ;;  %v383_v40 = vsub.f32 1.0, %v382_v32  ;;  %vm1146_vm14 = vmor %vm386_vm5, %vm387_vm8  ;;  %v407_v57 = vand.u32 2147483648, %v350_v24  ;;  %vm441_vm3 = vcmp.ge.s32.totalorder %v1068_v21, %v1034_v4 }
  0x65   : > { %v355_v38 = vadd.f32 %v733_v11, %v354_v30  ;;  %v405_v61 = vand.u32 2147483647, %v350_v24 }
  0x66   : > { %v370_v42 = vadd.f32 %v735_v14, %v369_v35  ;;  %v384_v45 = vmul.f32 %v739_v25, %v383_v40  ;;  %v408_v0 = vor.u32 1.1754944e-38, %v407_v57 }
  0x67   : > { %v359_v44 = vsel %vm1106_vm4, %v733_v11, %v355_v38  ;;  %vm406_vm8 = vcmp.eq.f32.partialorder %v405_v61, 8.507059e+37 }
  0x68   : > { %v364_v46 = vsel %vm1082_vm15, %v363_v31, %v359_v44  ;;  %v374_v47 = vsel %vm1115_vm7, %v735_v14, %v370_v42  ;;  %v385_v53 = vadd.f32 %v739_v25, %v384_v45  ;;  %vm451_vm15 = vmor %vm444_vm12, %vm448_vm6 }
  0x69   : > { %v741_v50 = vpop.eup %740  ;;  %v453_v51 = vsel %vm1077_vm13, -1.0, %v364_v46  ;;  %v379_v52 = vsel %vm376_vm9, %v378_v36, %v374_v47  ;;  %vm435_vm13 = vmor %vm430_vm0, %vm431_vm1 }
  0x6a   : > { %457 = vst [vmem:[%s1132_s11] sm:$0xff] %v453_v51  ;;  %v454_v54 = vsel %vm1125_vm11, -1.0, %v379_v52  ;;  %v397_v55 = vmul.f32 %v741_v50, %v350_v24  ;;  %v389_v56 = vsel %vm1146_vm14, %v739_v25, %v385_v53  ;;  %vm402_vm4 = vweird.f32 %v741_v50  ;;  %vm445_vm5 = vmor %vm435_vm13, %vm441_vm3 }
  0x6b   : > { %458 = vst [vmem:[%s1132_s11 + $0x8] sm:$0xff] %v454_v54  ;;  %v394_v58 = vsel %vm391_vm10, %v393_v49, %v389_v56  ;;  %vm403_vm7 = vmor %vm401_vm2, %vm402_vm4 }
  0x6c   : > { %v398_v60 = vsub.f32 1.0, %v397_v55  ;;  %v455_v62 = vsel %vm451_vm15, -1.0, %v394_v58  ;;  %vm452_vm1 = vmor %vm445_vm5, %vm448_vm6 }
  0x6d   : > { %459 = vst [vmem:[%s1132_s11 + $0x10] sm:$0xff] %v455_v62 }
  0x6e   : > { %v399_v63 = vmul.f32 %v741_v50, %v398_v60 }
  0x70   : > { %v400_v1 = vadd.f32 %v741_v50, %v399_v63 }
  0x72   : > { %v404_v2 = vsel %vm403_vm7, %v741_v50, %v400_v1 }
  0x73   : > { %v409_v3 = vsel %vm406_vm8, %v408_v0, %v404_v2 }
  0x74   : > { %v456_v4 = vsel %vm452_vm1, -1.0, %v409_v3 }
  0x75   : > { %460 = vst [vmem:[%s1132_s11 + $0x18] sm:$0xff] %v456_v4 }
  0x76 PF: > { %s18_s19 = sadd.s32 1, %s846_s19   ;;  %s1227_s12 = smov %s822_s13 }
  0x77   : > { %p15_p3 = scmp.ge.s32.totalorder %s18_s19, 6   ;;  %s1228_s13 = smov %s826_s14 }
  0x78   : > { %s1229_s14 = smov %s955_s7  ;;  %s1230_s15 = smov %s838_s17 }
  0x79   : > { %s1231_s16 = smov %s842_s18  ;;  %s1232_s17 = smov %s1235_s21 }
  0x7a   : > { %s1233_s18 = smov %s1239_s22  ;;  %17 = sbr.rel (!%p15_p3) target bundleno = 10 (0xa), region = 89 }
  0x7f   :  { %491 = vsyncpa [#allocation3], 1 }
  0x80   :  { %493 = vsyncpa [#allocation3 + $0x1], 1 }
  0x81   :  { %494 = vsyncpa [#allocation4], 1 }
  0x82   :  { %496 = vsyncpa [#allocation4 + $0x1], 1 }
  0x83   :  { %497 = vsyncpa [#allocation7], 1 }

// kernel: lfnet_forward.4
= control target key start
LH: loop header
LB: loop body
LE: loop exit
PB: predicated region body
PF: predicated region fallthrough
CT: control target
= control target key end

     0   :  { %s852_s12 = smov 0   ;;  %s977_s0 = inlined_call_operand.vmem [shape: bf16[1024,64], index: 0, kind: input, shape index: {}]   ;;  %s978_s1 = inlined_call_operand.vmem [shape: bf16[64,128], index: 1, kind: input, shape index: {}]   ;;  %s979_s2 = inlined_call_operand.vmem [shape: f32[1,128], index: 2, kind: input, shape index: {}]   ;;  %s980_s3 = inlined_call_operand.vmem [shape: bf16[1024,128], index: 3, kind: output, shape index: {}]  }
   0x1 LB: > { %s581_s13 = sadd.s32 4294967295, %s830_s12   ;;  %p585_p0 = scmp.ge.s32.totalorder %s830_s12, 1  ;;  %s830_s12 = sphi %s852_s12, %s13_s12  }
   0x2   : > { %p138_p1 = scmp.lt.s32.totalorder %s830_s12, 5 }
   0x4   : > { %p139_p2 = pnand %p585_p0, %p138_p1 }
   0x5   : > { %s586_s16 = sshll.u32 (!%p139_p2), %s581_s13, 5 }
   0x6   : > { %142 = sbr.rel (%p139_p2) target bundleno = 222 (0xde), region = 32  ;;  %p163_p3 = scmp.lt.s32.totalorder (!%p139_p2), %s586_s16, 127 }
   0xb   : > { %v707_v0 = vld [vmem:[%s978_s1 + $0x18] sm:$0xff]  ;;  %v706_v1 = vld [vmem:[%s978_s1 + $0x10] sm:$0xff]  ;;  %s982_s16 = smov (!%p163_p3, %s586_s16), 127  ;;  %v705_v2 = vld [vmem:[%s978_s1 + $0x8] sm:$0xff]  ;;  %vm323_vm0 = vcmask 523264  }
   0xc   : > { %376 = vmatpush.bf16.msra.mxu0 %v707_v0  ;;  %803 = vmatpush.bf16.msra.mxu1 %v707_v0  ;;  %s587_s21 = sshll.u32 %s982_s16, 2  ;;  %v704_v3 = vld [vmem:[%s978_s1] sm:$0xff] }
   0xd   : > { %804 = vmatpush.bf16.msra.mxu2 %v707_v0  ;;  %805 = vmatpush.bf16.msra.mxu3 %v707_v0  ;;  %s880_s26 = scalar_lea.vmem %s977_s0, %s587_s21  ;;  %v917_v22 = vld [vmem:[%s979_s2] ss:$0 sm:$0xff]  ;;  %s928_s4 = scalar_lea.vmem %s980_s3, %s587_s21 }
   0xe   : > { %v688_v4 = vld [vmem:[%s880_s26] sm:$0xff]  ;;  %v689_v8 = vld [vmem:[%s880_s26 + $0x8] sm:$0xff]  ;;  %v690_v12 = vld [vmem:[%s880_s26 + $0x10] sm:$0xff] }
   0xf   : > { %v692_v5 = vld [vmem:[%s880_s26 + $0x20] sm:$0xff]  ;;  %v693_v9 = vld [vmem:[%s880_s26 + $0x28] sm:$0xff]  ;;  %v694_v13 = vld [vmem:[%s880_s26 + $0x30] sm:$0xff] }
  0x10   : > { %377 = vmatpush.bf16.msra.mxu0 %v706_v1  ;;  %806 = vmatpush.bf16.msra.mxu1 %v706_v1  ;;  %v696_v6 = vld [vmem:[%s880_s26 + $0x40] sm:$0xff]  ;;  %v697_v10 = vld [vmem:[%s880_s26 + $0x48] sm:$0xff]  ;;  %v698_v14 = vld [vmem:[%s880_s26 + $0x50] sm:$0xff] }
  0x11   : > { %807 = vmatpush.bf16.msra.mxu2 %v706_v1  ;;  %808 = vmatpush.bf16.msra.mxu3 %v706_v1  ;;  %v700_v7 = vld [vmem:[%s880_s26 + $0x60] sm:$0xff]  ;;  %v701_v11 = vld [vmem:[%s880_s26 + $0x68] sm:$0xff]  ;;  %v702_v15 = vld [vmem:[%s880_s26 + $0x70] sm:$0xff] }
  0x12   : > { %v691_v16 = vld [vmem:[%s880_s26 + $0x18] sm:$0xff] }
  0x13   : > { %v695_v17 = vld [vmem:[%s880_s26 + $0x38] sm:$0xff] }
  0x14   : > { %378 = vmatpush.bf16.msra.mxu0 %v705_v2  ;;  %809 = vmatpush.bf16.msra.mxu1 %v705_v2  ;;  %v699_v18 = vld [vmem:[%s880_s26 + $0x58] sm:$0xff] }
  0x15   : > { %810 = vmatpush.bf16.msra.mxu2 %v705_v2  ;;  %811 = vmatpush.bf16.msra.mxu3 %v705_v2  ;;  %v703_v19 = vld [vmem:[%s880_s26 + $0x78] sm:$0xff] }
  0x18   : > { %379 = vmatpush.bf16.msra.mxu0 %v704_v3  ;;  %812 = vmatpush.bf16.msra.mxu1 %v704_v3 }
  0x19   : > { %813 = vmatpush.bf16.msra.mxu2 %v704_v3  ;;  %814 = vmatpush.bf16.msra.mxu3 %v704_v3 }
  0x1b   : > { %670 = vmatmul.msk.bf16.vlgmr.msra.gmra.mxu0 %vm323_vm0, %v688_v4  ;;  %674 = vmatmul.msk.bf16.vlgmr.msra.gmra.mxu1 %vm323_vm0, %v692_v5 }
  0x1c   : > { %678 = vmatmul.msk.bf16.vlgmr.msra.gmra.mxu2 %vm323_vm0, %v696_v6  ;;  %682 = vmatmul.msk.bf16.vlgmr.msra.gmra.mxu3 %vm323_vm0, %v700_v7 }
  0x2b   : > { %671 = vmatmul.msk.bf16.gmra.mxu0 %vm323_vm0, %v689_v8  ;;  %675 = vmatmul.msk.bf16.gmra.mxu1 %vm323_vm0, %v693_v9 }
  0x2c   : > { %679 = vmatmul.msk.bf16.gmra.mxu2 %vm323_vm0, %v697_v10  ;;  %683 = vmatmul.msk.bf16.gmra.mxu3 %vm323_vm0, %v701_v11 }
  0x3b   : > { %672 = vmatmul.msk.bf16.gmra.mxu0 %vm323_vm0, %v690_v12  ;;  %676 = vmatmul.msk.bf16.gmra.mxu1 %vm323_vm0, %v694_v13 }
  0x3c   : > { %680 = vmatmul.msk.bf16.gmra.mxu2 %vm323_vm0, %v698_v14  ;;  %684 = vmatmul.msk.bf16.gmra.mxu3 %vm323_vm0, %v702_v15 }
  0x4b   : > { %673 = vmatmul.msk.bf16.gmra.mxu0 %vm323_vm0, %v691_v16  ;;  %677 = vmatmul.msk.bf16.gmra.mxu1 %vm323_vm0, %v695_v17 }
  0x4c   : > { %681 = vmatmul.msk.bf16.gmra.mxu2 %vm323_vm0, %v699_v18  ;;  %685 = vmatmul.msk.bf16.gmra.mxu3 %vm323_vm0, %v703_v19 }
  0x98   : > { %v381_v20 = vpop.f32.mrf.mxu0  ;;  %v401_v21 = vpop.f32.mrf.mxu1 }
  0x99   : > { %v382_v27 = vadd.f32 %v917_v22, %v381_v20  ;;  %v402_v28 = vadd.f32 %v917_v22, %v401_v21 }
  0x9f   : > { %v421_v23 = vpop.f32.mrf.mxu2  ;;  %v441_v24 = vpop.f32.mrf.mxu3 }
  0xa0   : > { %v383_v25 = vpop.f32.mrf.mxu0  ;;  %v403_v26 = vpop.f32.mrf.mxu1  ;;  %v422_v35 = vadd.f32 %v917_v22, %v421_v23  ;;  %v442_v36 = vadd.f32 %v917_v22, %v441_v24 }
  0xa1   : > { %v384_v29 = vadd.f32 %v917_v22, %v383_v25  ;;  %v404_v30 = vadd.f32 %v917_v22, %v403_v26 }
  0xa3   : > { %v711_v31 = vpack.c.bf16 %v384_v29, %v382_v27  ;;  %v731_v32 = vpack.c.bf16 %v404_v30, %v402_v28 }
  0xa5   : > { %712 = vst [vmem:[%s928_s4] sm:$0xff] %v711_v31  }
  0xa6   : > { %791 = vst [vmem:[%s928_s4 + $0x20] sm:$0xff] %v731_v32  }
  0xa7   : > { %v423_v33 = vpop.f32.mrf.mxu2  ;;  %v443_v34 = vpop.f32.mrf.mxu3 }
  0xa8   : > { %v424_v37 = vadd.f32 %v917_v22, %v423_v33  ;;  %v444_v38 = vadd.f32 %v917_v22, %v443_v34  ;;  %v386_v39 = vpop.f32.mrf.mxu0  ;;  %v406_v40 = vpop.f32.mrf.mxu1 }
  0xa9   : > { %v387_v47 = vadd.f32 %v917_v22, %v386_v39  ;;  %v407_v48 = vadd.f32 %v917_v22, %v406_v40 }
  0xaa   : > { %v751_v41 = vpack.c.bf16 %v424_v37, %v422_v35  ;;  %v771_v42 = vpack.c.bf16 %v444_v38, %v442_v36 }
  0xac   : > { %795 = vst [vmem:[%s928_s4 + $0x40] sm:$0xff] %v751_v41  }
  0xad   : > { %799 = vst [vmem:[%s928_s4 + $0x60] sm:$0xff] %v771_v42  }
  0xaf   : > { %v426_v43 = vpop.f32.mrf.mxu2  ;;  %v446_v44 = vpop.f32.mrf.mxu3 }
  0xb0   : > { %v388_v45 = vpop.f32.mrf.mxu0  ;;  %v408_v46 = vpop.f32.mrf.mxu1  ;;  %v427_v55 = vadd.f32 %v917_v22, %v426_v43  ;;  %v447_v56 = vadd.f32 %v917_v22, %v446_v44 }
  0xb1   : > { %v389_v49 = vadd.f32 %v917_v22, %v388_v45  ;;  %v409_v50 = vadd.f32 %v917_v22, %v408_v46 }
  0xb3   : > { %v716_v51 = vpack.c.bf16 %v389_v49, %v387_v47  ;;  %v736_v52 = vpack.c.bf16 %v409_v50, %v407_v48 }
  0xb5   : > { %788 = vst [vmem:[%s928_s4 + $0x8] sm:$0xff] %v716_v51  }
  0xb6   : > { %792 = vst [vmem:[%s928_s4 + $0x28] sm:$0xff] %v736_v52  }
  0xb7   : > { %v428_v53 = vpop.f32.mrf.mxu2  ;;  %v448_v54 = vpop.f32.mrf.mxu3 }
  0xb8   : > { %v429_v57 = vadd.f32 %v917_v22, %v428_v53  ;;  %v449_v58 = vadd.f32 %v917_v22, %v448_v54  ;;  %v391_v59 = vpop.f32.mrf.mxu0  ;;  %v411_v60 = vpop.f32.mrf.mxu1 }
  0xb9   : > { %v392_v3 = vadd.f32 %v917_v22, %v391_v59  ;;  %v412_v4 = vadd.f32 %v917_v22, %v411_v60 }
  0xba   : > { %v756_v61 = vpack.c.bf16 %v429_v57, %v427_v55  ;;  %v776_v62 = vpack.c.bf16 %v449_v58, %v447_v56 }
  0xbc   : > { %796 = vst [vmem:[%s928_s4 + $0x48] sm:$0xff] %v756_v61  }
  0xbd   : > { %800 = vst [vmem:[%s928_s4 + $0x68] sm:$0xff] %v776_v62  }
  0xbf   : > { %v431_v63 = vpop.f32.mrf.mxu2  ;;  %v451_v0 = vpop.f32.mrf.mxu3 }
  0xc0   : > { %v393_v1 = vpop.f32.mrf.mxu0  ;;  %v413_v2 = vpop.f32.mrf.mxu1  ;;  %v432_v11 = vadd.f32 %v917_v22, %v431_v63  ;;  %v452_v12 = vadd.f32 %v917_v22, %v451_v0 }
  0xc1   : > { %v394_v5 = vadd.f32 %v917_v22, %v393_v1  ;;  %v414_v6 = vadd.f32 %v917_v22, %v413_v2 }
  0xc3   : > { %v721_v7 = vpack.c.bf16 %v394_v5, %v392_v3  ;;  %v741_v8 = vpack.c.bf16 %v414_v6, %v412_v4 }
  0xc5   : > { %789 = vst [vmem:[%s928_s4 + $0x10] sm:$0xff] %v721_v7  }
  0xc6   : > { %793 = vst [vmem:[%s928_s4 + $0x30] sm:$0xff] %v741_v8  }
  0xc7   : > { %v433_v9 = vpop.f32.mrf.mxu2  ;;  %v453_v10 = vpop.f32.mrf.mxu3 }
  0xc8   : > { %v434_v13 = vadd.f32 %v917_v22, %v433_v9  ;;  %v454_v14 = vadd.f32 %v917_v22, %v453_v10  ;;  %v396_v15 = vpop.f32.mrf.mxu0  ;;  %v416_v16 = vpop.f32.mrf.mxu1 }
  0xc9   : > { %v397_v24 = vadd.f32 %v917_v22, %v396_v15  ;;  %v417_v25 = vadd.f32 %v917_v22, %v416_v16 }
  0xca   : > { %v761_v17 = vpack.c.bf16 %v434_v13, %v432_v11  ;;  %v781_v18 = vpack.c.bf16 %v454_v14, %v452_v12 }
  0xcc   : > { %797 = vst [vmem:[%s928_s4 + $0x50] sm:$0xff] %v761_v17  }
  0xcd   : > { %801 = vst [vmem:[%s928_s4 + $0x70] sm:$0xff] %v781_v18  }
  0xcf   : > { %v436_v19 = vpop.f32.mrf.mxu2  ;;  %v456_v20 = vpop.f32.mrf.mxu3 }
  0xd0   : > { %v398_v21 = vpop.f32.mrf.mxu0  ;;  %v418_v23 = vpop.f32.mrf.mxu1  ;;  %v437_v32 = vadd.f32 %v917_v22, %v436_v19  ;;  %v457_v33 = vadd.f32 %v917_v22, %v456_v20 }
  0xd1   : > { %v399_v26 = vadd.f32 %v917_v22, %v398_v21  ;;  %v419_v27 = vadd.f32 %v917_v22, %v418_v23 }
  0xd3   : > { %v726_v28 = vpack.c.bf16 %v399_v26, %v397_v24  ;;  %v746_v29 = vpack.c.bf16 %v419_v27, %v417_v25 }
  0xd5   : > { %790 = vst [vmem:[%s928_s4 + $0x18] sm:$0xff] %v726_v28  }
  0xd6   : > { %794 = vst [vmem:[%s928_s4 + $0x38] sm:$0xff] %v746_v29  }
  0xd7   : > { %v438_v30 = vpop.f32.mrf.mxu2  ;;  %v458_v31 = vpop.f32.mrf.mxu3 }
  0xd8   : > { %v439_v34 = vadd.f32 %v917_v22, %v438_v30  ;;  %v459_v35 = vadd.f32 %v917_v22, %v458_v31 }
  0xda   : > { %v766_v36 = vpack.c.bf16 %v439_v34, %v437_v32  ;;  %v786_v37 = vpack.c.bf16 %v459_v35, %v457_v33 }
  0xdc   : > { %798 = vst [vmem:[%s928_s4 + $0x58] sm:$0xff] %v766_v36  }
  0xdd   : > { %802 = vst [vmem:[%s928_s4 + $0x78] sm:$0xff] %v786_v37  }
  0xde PF: > { %s13_s12 = sadd.s32 1, %s830_s12  }
  0xdf   : > { %p10_p4 = scmp.ge.s32.totalorder %s13_s12, 6  }
  0xe1   :  { %12 = sbr.rel (!%p10_p4) target bundleno = 1 (0x1), region = 62 }

// kernel: lfnet_forward.5
= control target key start
LH: loop header
LB: loop body
LE: loop exit
PB: predicated region body
PF: predicated region fallthrough
CT: control target
= control target key end

     0   :  { %8 = vsyncpa [#allocation3], 0  ;;  %s2289_s0 = inlined_call_operand.vmem [shape: f32[2,64,2], index: 0, kind: input, shape index: {}]   ;;  %s2290_s1 = inlined_call_operand.vmem [shape: f32[2,64,1], index: 1, kind: input, shape index: {}]   ;;  %s2291_s2 = inlined_call_operand.vmem [shape: bf16[2,512,128], index: 2, kind: input, shape index: {}]   ;;  %s2292_s3 = inlined_call_operand.hbm [shape: f32[2,64,128], index: 3, kind: output, shape index: {}]  }
   0x1   :  { %10 = vsyncpa [#allocation3 + $0x1], 0  ;;  %s1592_s12 = smov 0   ;;  %s1594_s13 = smov 0  }
   0x2   :  { %s1596_s14 = smov 0   ;;  %s1598_s15 = smov 0  }
   0x3   :  { %s1600_s16 = smov 0   ;;  %s1602_s17 = smov 0  }
   0x4   :  { %s1604_s18 = smov 0   ;;  %s1606_s19 = smov 0  }
   0x5 LB: > { %s1233_s20 = sadd.s32 4294967295, %s1563_s19   ;;  %s1234_s21 = sadd.s32 4294967294, %s1563_s19   ;;  %s1563_s19 = sphi %s1606_s19, %s16_s19   ;;  %s1559_s18 = sphi %s1604_s18, %s2308_s18   ;;  %s1555_s17 = sphi %s1602_s17, %s2307_s17   ;;  %s1551_s16 = sphi %s1600_s16, %s2306_s16   ;;  %s1547_s15 = sphi %s1598_s15, %s2305_s15   ;;  %s1543_s14 = sphi %s1596_s14, %s2304_s14   ;;  %s1539_s13 = sphi %s1594_s13, %s2303_s13   ;;  %s1535_s12 = sphi %s1592_s12, %s2302_s12  }
   0x6   : > { %s25_s22 = sadd.s32 1, %s1555_s17  ;;  %s28_s23 = sadd.s32 1, %s1559_s18 }
   0x7   : > { %p26_p0 = scmp.ge.s32.totalorder %s25_s22, 2  ;;  %p125_p1 = scmp.ne.s32.totalorder %s1543_s14, %s1539_s13 }
   0x8   : > { %p126_p2 = scmp.eq.s32.totalorder %s1233_s20, 3  ;;  %p131_p4 = scmp.ne.s32.totalorder %s1539_s13, %s1535_s12 }
   0x9   : > { %s2310_s22 = smov (%p26_p0, %s25_s22), 0  ;;  %s2312_s23 = smov (!%p26_p0, %s28_s23), %s1559_s18 }
   0xa   : > { %2295 = sst [smem:[#allocation5_spill]] %s2310_s22  ;;  %p1641_p3 = por %p126_p2, %p125_p1 }
   0xb   : > { %p30_p5 = scmp.ge.s32.totalorder %s2312_s23, 2  ;;  %p132_p6 = scmp.eq.s32.totalorder %s1234_s21, 3 }
   0xc   : > { %p1237_p7 = scmp.ge.s32.totalorder %s1563_s19, 1  ;;  %p179_p8 = scmp.lt.s32.totalorder %s1563_s19, 5 }
   0xd   : > { %s2314_s23 = smov (%p30_p5, %s2312_s23), 0  ;;  %p1651_p9 = por %p132_p6, %p131_p4 }
   0xe   : > { %2297 = sst [smem:[#allocation6_spill]] %s2314_s23  ;;  %p180_p10 = pnand %p1237_p7, %p179_p8 }
   0xf   : > { %s112_s26 = ssub.s32 %s1559_s18, %s2314_s23  ;;  %s115_s27 = sadd.s32 1, %s1543_s14 }
  0x10   : > { %p113_p11 = scmp.eq.s32.totalorder %s112_s26, 0  ;;  %183 = sbr.rel (%p180_p10) target bundleno = 660 (0x294), region = 32 }
  0x11   : > { %s2294_s29 = sand.u32 (!%p180_p10), 1, %s1539_s13   ;;  %p217_p12 = scmp.lt.s32.totalorder (!%p180_p10), %s1551_s16, 1 }
  0x12   : > { %s1659_s28 = scalar_select %p113_p11, %s1543_s14, %s115_s27  }
  0x13   : > { %s1238_s30 = sshll.u32 (!%p180_p10), %s2294_s29, 6  ;;  %s1243_s4 = sshll.u32 (!%p180_p10), %s1547_s15, 5 }
  0x14   : > { %p230_p13 = scmp.lt.s32.totalorder (!%p180_p10), %s1243_s4, 63  ;;  %s1682_s22 = scalar_lea.vmem (!%p180_p10), [#allocation2], %s1238_s30 }
  0x15   : > { %s218_s5 = scalar_select %p217_p12, %s1551_s16, 1 }
  0x16   : > { %s2316_s4 = smov (!%p230_p13, %s1243_s4), 63  ;;  %p1246_p0 = scmp.ne.s32.totalorder %s1547_s15, 0 }
  0x17   : > { %s1317_s6 = sshll.u32 %s218_s5, 6 }
  0x18   : > { %s1670_s9 = scalar_lea.vmem %s2289_s0, %s1317_s6  ;;  %s1675_s20 = scalar_lea.vmem %s2290_s1, %s1317_s6 }
  0x19   : > { %s233_s21 = sadd.s32 %s1317_s6, %s2316_s4  ;;  %240 = sbr.rel (%p1246_p0) target bundleno = 39 (0x27), region = 36 }
  0x1a   : > { %s1245_s26 = sshll.u32 %s233_s21, 2 }
  0x1b   : > { %s1680_s29 = scalar_lea.vmem %s2291_s2, %s1245_s26 }
  0x1e   : > { %v1565_v0 = vmov 0.0  }
  0x1f   : > { %241 = vst [vmem:[%s1682_s22] sm:$0xff] %v1565_v0 }
  0x20   : > { %242 = vst [vmem:[%s1682_s22 + $0x8] sm:$0xff] %v1565_v0 }
  0x21   : > { %243 = vst [vmem:[%s1682_s22 + $0x10] sm:$0xff] %v1565_v0 }
  0x22   : > { %244 = vst [vmem:[%s1682_s22 + $0x18] sm:$0xff] %v1565_v0 }
  0x23   : > { %245 = vst [vmem:[%s1682_s22 + $0x20] sm:$0xff] %v1565_v0 }
  0x24   : > { %246 = vst [vmem:[%s1682_s22 + $0x28] sm:$0xff] %v1565_v0 }
  0x25   : > { %247 = vst [vmem:[%s1682_s22 + $0x30] sm:$0xff] %v1565_v0 }
  0x26   : > { %248 = vst [vmem:[%s1682_s22 + $0x38] sm:$0xff] %v1565_v0 }
  0x27 PF: > { %v251_v1 = vld [vmem:[%s1670_s9 + $0x10] sm:$0xff]  ;;  %v249_v2 = vld [vmem:[%s1670_s9] sm:$0xff]  ;;  %v252_v3 = vld [vmem:[%s1670_s9 + $0x18] sm:$0xff]  ;;  %s1566_s23 = smov 127   ;;  %s1567_s30 = smov 1   ;;  %v1568_v50 = vmov 0  }
  0x28   : > { %v267_v4 = vmul.f32 0.25, %v251_v1  ;;  %v265_v5 = vmul.f32 0.25, %v249_v2  ;;  %v268_v6 = vmul.f32 0.25, %v252_v3  ;;  %v250_v7 = vld [vmem:[%s1670_s9 + $0x8] sm:$0xff]  ;;  %v253_v9 = vld [vmem:[%s1670_s9 + $0x20] sm:$0xff]  ;;  %v256_v19 = vld [vmem:[%s1670_s9 + $0x38] sm:$0xff]  ;;  %1449 = vset.pattern.permute.xlu0 %v1568_v50 }
  0x29   : > { %v266_v8 = vmul.f32 0.25, %v250_v7  ;;  %v254_v10 = vld [vmem:[%s1670_s9 + $0x28] sm:$0xff]  ;;  %v269_v13 = vmul.f32 0.25, %v253_v9  ;;  %v255_v21 = vld [vmem:[%s1670_s9 + $0x30] sm:$0xff]  ;;  %v272_v26 = vmul.f32 0.25, %v256_v19  ;;  %v1800_v52 = vld [vmem:[%s1675_s20] sm:$0xff] }
  0x2a   : > { %v275_v11 = vfloor.f32 %v267_v4  ;;  %v273_v12 = vfloor.f32 %v265_v5  ;;  %v276_v14 = vfloor.f32 %v268_v6  ;;  %v270_v15 = vmul.f32 0.25, %v254_v10  ;;  %v1817_v63 = vld [vmem:[%s1675_s20 + $0x18] sm:$0xff]  ;;  %v258_v3 = vld [vmem:[%s1675_s20 + $0x8] sm:$0xff]  ;;  %s1247_s4 = sshll.u32 %s1547_s15, 8  ;;  %s1335_s15 = sshll.u32 %s1551_s16, 6 }
  0x2b   : > { %v274_v18 = vfloor.f32 %v266_v8  ;;  %v277_v20 = vfloor.f32 %v269_v13  ;;  %v271_v29 = vmul.f32 0.25, %v255_v21  ;;  %v280_v34 = vfloor.f32 %v272_v26  ;;  %s1126_s6 = scalar_lea.hbm %s2292_s3, %s1335_s15  ;;  %s1127_s7 = sshll.u32 %s1682_s22, 4  ;;  %s1128_s7 = int_to_ptr.vmem [resolvable:$true] %s1127_s7 }
  0x2c   : > { %v1699_v16 = vsub.f32 %v267_v4, %v275_v11  ;;  %v1701_v17 = vsub.f32 %v265_v5, %v273_v12  ;;  %v278_v25 = vfloor.f32 %v270_v15  ;;  %v1717_v27 = vsub.f32 %v268_v6, %v276_v14  ;;  %s1129_s8 = sshll.u32 %s1126_s6, 4  ;;  %s2299_s9 = sand.u32 1, %s1539_s13   ;;  %s1130_s8 = int_to_ptr.hbm [resolvable:$true] %s1129_s8 }
  0x2d   : > { %v1711_v24 = vsub.f32 %v269_v13, %v277_v20  ;;  %v1719_v28 = vsub.f32 %v266_v8, %v274_v18  ;;  %v279_v35 = vfloor.f32 %v271_v29  ;;  %v1741_v37 = vsub.f32 %v272_v26, %v280_v34  ;;  %s1115_s10 = scalar_lea.sflag [#allocation3], %s2299_s9  ;;  %s1483_s16 = sshra.s32 %s1130_s8, 4  ;;  %s1484_s16 = int_to_ptr.hbm [resolvable:$true] %s1483_s16 }
  0x2e   : > { %v1706_v22 = vsub.f32 1.0, %v1699_v16  ;;  %v1709_v23 = vsub.f32 1.0, %v1701_v17  ;;  %v1726_v31 = vsub.f32 %v270_v15, %v278_v25  ;;  %v1729_v32 = vsub.f32 1.0, %v1717_v27  ;;  %s1485_s11 = scalar_lea.hbm %s1484_s16, 64  ;;  %s1489_s26 = scalar_lea.hbm %s2292_s3, 128 }
  0x2f   : > { %v1722_v30 = vsub.f32 1.0, %v1711_v24  ;;  %v1732_v33 = vsub.f32 1.0, %v1719_v28  ;;  %v1743_v38 = vsub.f32 %v271_v29, %v279_v35  ;;  %v1748_v39 = vsub.f32 1.0, %v1741_v37  ;;  %p1486_p1 = scmp.ne.s32.totalorder %s1484_s16, %s1485_s11  ;;  %p1490_p5 = scmp.lt.s32.totalorder %s1484_s16, %s2292_s3 }
  0x30   : > { %309 = vrot.lane.b32.xlu1 %v1706_v22, %s1566_s23  ;;  %305 = vrot.lane.b32.xlu0 %v1709_v23, %s1566_s23  ;;  %v1735_v36 = vsub.f32 1.0, %v1726_v31  ;;  %v1771_v41 = vcvt.f32.s32 %v273_v12  ;;  %v1355_v42 = vcvt.f32.s32 %v274_v18  ;;  %v1776_v43 = vcvt.f32.s32 %v276_v14  ;;  %v1839_v14 = vld [vmem:[%s1675_s20 + $0x38] sm:$0xff]  ;;  %p1491_p6 = scmp.lt.s32.totalorder %s1489_s26, %s1485_s11 }
  0x31   : > { %313 = vrot.lane.b32.xlu2 %v1722_v30, %s1566_s23  ;;  %v1751_v40 = vsub.f32 1.0, %v1743_v38  ;;  %v1778_v44 = vcvt.f32.s32 %v275_v11  ;;  %v1780_v45 = vcvt.f32.s32 %v277_v20  ;;  %v1785_v46 = vcvt.f32.s32 %v279_v35  ;;  %v263_v11 = vld [vmem:[%s1675_s20 + $0x30] sm:$0xff]  ;;  %p1487_p2 = pnand %p1486_p1, %p1641_p3 }
  0x32   : > { %v1787_v47 = vcvt.f32.s32 %v278_v25  ;;  %v1789_v48 = vcvt.f32.s32 %v280_v34  ;;  %v1569_v8 = vmov 1   ;;  %v434_v19 = vmul.u32 32, %v1355_v42  ;;  %p1492_p7 = por %p1491_p6, %p1490_p5 }
  0x33   : > { %1446 = vset.pattern.permute.xlu1 %v1569_v8  ;;  %1447 = vset.pattern.permute.xlu2 %v1569_v8  ;;  %p1488_p4 = pneg %p1487_p2 }
  0x35   : > { %p1493_p8 = pnand %p1492_p7, %p1488_p4 }
  0x38   : > { %311 = vrot.lane.b32.xlu1 %v1729_v32, %s1566_s23  ;;  %307 = vrot.lane.b32.xlu0 %v1732_v33, %s1566_s23 }
  0x39   : > { %315 = vrot.lane.b32.xlu2 %v1735_v36, %s1566_s23 }
  0x40   : > { %319 = vrot.lane.b32.xlu1 %v1748_v39, %s1566_s23  ;;  %317 = vrot.lane.b32.xlu0 %v1751_v40, %s1566_s23 }
  0x41   : > { %353 = vrot.lane.b32.xlu2 %v1701_v17, %s1566_s23 }
  0x48   : > { %357 = vrot.lane.b32.xlu1 %v1699_v16, %s1566_s23  ;;  %355 = vrot.lane.b32.xlu0 %v1719_v28, %s1566_s23 }
  0x49   : > { %359 = vrot.lane.b32.xlu2 %v1717_v27, %s1566_s23 }
  0x50   : > { %363 = vrot.lane.b32.xlu1 %v1726_v31, %s1566_s23  ;;  %361 = vrot.lane.b32.xlu0 %v1711_v24, %s1566_s23 }
  0x51   : > { %365 = vrot.lane.b32.xlu2 %v1743_v38, %s1566_s23 }
  0x58   : > { %441 = vrot.lane.b32.xlu1 %v1771_v41, %s1567_s30  ;;  %367 = vrot.lane.b32.xlu0 %v1741_v37, %s1566_s23 }
  0x59   : > { %443 = vrot.lane.b32.xlu2 %v1355_v42, %s1567_s30 }
  0x60   : > { %447 = vrot.lane.b32.xlu1 %v1776_v43, %s1567_s30  ;;  %445 = vrot.lane.b32.xlu0 %v1778_v44, %s1567_s30 }
  0x61   : > { %449 = vrot.lane.b32.xlu2 %v1780_v45, %s1567_s30 }
  0x68   : > { %453 = vrot.lane.b32.xlu1 %v1785_v46, %s1567_s30  ;;  %451 = vrot.lane.b32.xlu0 %v1787_v47, %s1567_s30 }
  0x69   : > { %455 = vrot.lane.b32.xlu2 %v1789_v48, %s1567_s30 }
  0x8b   : > { %v1794_v49 = vpop.permute.xlu2 %313 }
  0x93   : > { %v1797_v51 = vpop.permute.xlu2 %315 }
  0x9b   : > { %v354_v53 = vpop.permute.xlu2 %353 }
  0x9c   : > { %v377_v54 = vmul.f32 %v354_v53, %v1709_v23  ;;  %v409_v55 = vmul.f32 %v354_v53, %v1701_v17 }
  0x9e   : > { %v1805_v56 = vmul.f32 %v377_v54, %v1800_v52  ;;  %v1808_v57 = vmul.f32 %v409_v55, %v1800_v52 }
  0xa2   : > { %v1810_v58 = vpop.permute.xlu1 %309  ;;  %v1812_v59 = vpop.permute.xlu0 %305 }
  0xa3   : > { %v360_v60 = vpop.permute.xlu2 %359 }
  0xa4   : > { %v380_v61 = vmul.f32 %v360_v60, %v1729_v32  ;;  %v412_v62 = vmul.f32 %v360_v60, %v1717_v27 }
  0xa6   : > { %v1820_v0 = vmul.f32 %v380_v61, %v1817_v63  ;;  %v1823_v1 = vmul.f32 %v412_v62, %v1817_v63  ;;  %v1863_v62 = vld [vmem:[%s1675_s20 + $0x10] sm:$0xff] }
  0xaa   : > { %v1825_v2 = vpop.permute.xlu1 %311  ;;  %v308_v4 = vpop.permute.xlu0 %307 }
  0xab   : > { %v394_v5 = vmul.f32 %v308_v4, %v1719_v28  ;;  %v366_v6 = vpop.permute.xlu2 %365  ;;  %v330_v42 = vmul.f32 %v308_v4, %v1732_v33 }
  0xac   : > { %v383_v9 = vmul.f32 %v366_v6, %v1751_v40  ;;  %v415_v10 = vmul.f32 %v366_v6, %v1743_v38 }
  0xad   : > { %v402_v7 = vmul.f32 %v394_v5, %v258_v3  ;;  %v338_v55 = vmul.f32 %v330_v42, %v258_v3 }
  0xae   : > { %v1834_v12 = vmul.f32 %v383_v9, %v263_v11  ;;  %v1836_v13 = vmul.f32 %v415_v10, %v263_v11  ;;  %v1875_v9 = vld [vmem:[%s1675_s20 + $0x20] sm:$0xff] }
  0xaf   : > { %583 = vperm.xlu0 %1449, %v402_v7   ;;  %v333_v7 = vmul.f32 %v1794_v49, %v1722_v30 }
  0xb2   : > { %v1841_v15 = vpop.permute.xlu1 %319  ;;  %v318_v18 = vpop.permute.xlu0 %317 }
  0xb3   : > { %v336_v20 = vmul.f32 %v1841_v15, %v1748_v39  ;;  %v335_v21 = vmul.f32 %v318_v18, %v1751_v40  ;;  %v399_v25 = vmul.f32 %v318_v18, %v1743_v38  ;;  %v444_v26 = vpop.permute.xlu2 %443 }
  0xb4   : > { %v1852_v53 = vadd.s32 %v444_v26, %v434_v19 }
  0xb5   : > { %v1848_v29 = vmul.f32 %v336_v20, %v1839_v14  ;;  %v1850_v34 = vmul.f32 %v335_v21, %v263_v11  ;;  %v407_v35 = vmul.f32 %v399_v25, %v263_v11  ;;  %v341_v11 = vmul.f32 %v333_v7, %v1875_v9 }
  0xb6   : > { %500 = vperm.xlu1 %1446, %v1852_v53  }
  0xb7   : > { %608 = vperm.xlu0 %1449, %v407_v35  }
  0xba   : > { %v1856_v54 = vpop.permute.xlu1 %357  ;;  %v356_v40 = vpop.permute.xlu0 %355 }
  0xbb   : > { %v411_v38 = vmul.f32 %v1856_v54, %v1699_v16  ;;  %v378_v60 = vmul.f32 %v356_v40, %v1732_v33  ;;  %v410_v61 = vmul.f32 %v356_v40, %v1719_v28  ;;  %v436_v40 = vmul.u32 32, %v1776_v43  ;;  %v450_v7 = vpop.permute.xlu2 %449 }
  0xbc   : > { %v439_v43 = vmul.u32 32, %v1785_v46  ;;  %v474_v46 = vadd.s32 1, %v1852_v53 }
  0xbd   : > { %v1866_v5 = vmul.f32 %v411_v38, %v1863_v62  ;;  %v1868_v4 = vmul.f32 %v378_v60, %v258_v3  ;;  %v1870_v6 = vmul.f32 %v410_v61, %v258_v3 }
  0xbf   : > { %639 = vperm.xlu0 %1449, %v338_v55   ;;  %v433_v55 = vmul.u32 32, %v1771_v41  ;;  %v438_v41 = vmul.u32 32, %v1787_v47 }
  0xc2   : > { %v1877_v10 = vpop.permute.xlu1 %363  ;;  %v362_v33 = vpop.permute.xlu0 %361 }
  0xc3   : > { %v413_v28 = vmul.f32 %v362_v33, %v1711_v24  ;;  %v381_v19 = vmul.f32 %v362_v33, %v1722_v30  ;;  %v435_v30 = vmul.u32 32, %v1778_v44  ;;  %v437_v33 = vmul.u32 32, %v1780_v45 }
  0xc4   : > { %v440_v45 = vmul.u32 32, %v1789_v48 }
  0xc5   : > { %v1882_v18 = vmul.f32 %v413_v28, %v1875_v9  ;;  %v389_v21 = vmul.f32 %v381_v19, %v1875_v9  ;;  %v1910_v44 = vadd.s32 %v450_v7, %v437_v33  ;;  %v393_v7 = vmul.f32 %v1812_v59, %v1701_v17 }
  0xc6   : > { %v396_v17 = vmul.f32 %v1825_v2, %v1717_v27 }
  0xc7   : > { %654 = vperm.xlu0 %1449, %v341_v11  }
  0xca   : > { %v442_v3 = vpop.permute.xlu1 %441  ;;  %v368_v20 = vpop.permute.xlu0 %367 }
  0xcb   : > { %v384_v25 = vmul.f32 %v368_v20, %v1748_v39  ;;  %v416_v26 = vmul.f32 %v368_v20, %v1741_v37  ;;  %v1904_v28 = vadd.s32 %v442_v3, %v433_v55  ;;  %v456_v3 = vpop.permute.xlu2 %455 }
  0xcd   : > { %v1889_v35 = vmul.f32 %v384_v25, %v1839_v14  ;;  %v1892_v42 = vmul.f32 %v416_v26, %v1839_v14  ;;  %v464_v25 = vadd.s32 %v456_v3, %v440_v45  ;;  %v473_v47 = vadd.s32 1, %v1904_v28 }
  0xce   : > { %v477_v26 = vadd.s32 1, %v1910_v44  ;;  %v466_v45 = vadd.s32 32, %v1852_v53  ;;  %v398_v3 = vmul.f32 %v1797_v51, %v1726_v31  ;;  %v331_v53 = vmul.f32 %v1810_v58, %v1706_v22 }
  0xcf   : > { %846 = vperm.xlu0 %1449, %v389_v21   ;;  %v480_v48 = vadd.s32 1, %v464_v25 }
  0xd2   : > { %v448_v38 = vpop.permute.xlu1 %447  ;;  %v446_v60 = vpop.permute.xlu0 %445 }
  0xd3   : > { %v1897_v61 = vadd.s32 %v448_v38, %v436_v40  ;;  %v1899_v39 = vadd.s32 %v446_v60, %v435_v30  ;;  %v395_v60 = vmul.f32 %v1810_v58, %v1699_v16  ;;  %v397_v16 = vmul.f32 %v1794_v49, %v1711_v24  ;;  %v262_v24 = vld [vmem:[%s1675_s20 + $0x28] sm:$0xff] }
  0xd4   : > { %v406_v27 = vmul.f32 %v398_v3, %v262_v24 }
  0xd5   : > { %506 = vperm.xlu1 %1446, %v1897_v61   ;;  %503 = vperm.xlu2 %1447, %v1899_v39   ;;  %v475_v40 = vadd.s32 1, %v1899_v39  ;;  %v476_v30 = vadd.s32 1, %v1897_v61  ;;  %v1957_v58 = vadd.s32 32, %v1897_v61 }
  0xd7   : > { %1455 = vset.pattern.permute.xlu0 %v1569_v8 }
  0xd8   : > { %497 = vperm.xlu0 %1455, %v1904_v28  }
  0xda   : > { %v454_v11 = vpop.permute.xlu1 %453  ;;  %v452_v19 = vpop.permute.xlu0 %451 }
  0xdb   : > { %v463_v20 = vadd.s32 %v454_v11, %v439_v43  ;;  %v462_v21 = vadd.s32 %v452_v19, %v438_v41  ;;  %v403_v43 = vmul.f32 %v395_v60, %v1863_v62  ;;  %v401_v41 = vmul.f32 %v393_v7, %v1800_v52 }
  0xdc   : > { %v405_v19 = vmul.f32 %v397_v16, %v1875_v9 }
  0xdd   : > { %515 = vperm.xlu1 %1446, %v463_v20   ;;  %509 = vperm.xlu2 %1447, %v1910_v44   ;;  %v478_v55 = vadd.s32 1, %v462_v21  ;;  %v479_v38 = vadd.s32 1, %v463_v20  ;;  %v470_v33 = vadd.s32 32, %v462_v21  ;;  %v1939_v49 = vadd.s32 32, %v463_v20 }
  0xde   : > { %v1949_v20 = vadd.s32 32, %v464_v25 }
  0xdf   : > { %v486_v11 = vadd.s32 1, %v470_v33  ;;  %v487_v9 = vadd.s32 1, %v1939_v49 }
  0xe0   : > { %512 = vperm.xlu0 %1455, %v462_v21   ;;  %v404_v21 = vmul.f32 %v396_v17, %v1817_v63 }
  0xe5   : > { %540 = vperm.xlu1 %1446, %v474_v46   ;;  %518 = vperm.xlu2 %1447, %v464_v25   ;;  %v400_v46 = vmul.f32 %v1841_v15, %v1741_v37  ;;  %v339_v37 = vmul.f32 %v331_v53, %v1863_v62 }
  0xe8   : > { %537 = vperm.xlu0 %1455, %v473_v47   ;;  %v408_v47 = vmul.f32 %v400_v46, %v1839_v14  ;;  %v334_v14 = vmul.f32 %v1797_v51, %v1735_v36  ;;  %v469_v51 = vadd.s32 32, %v1910_v44 }
  0xed   : > { %549 = vperm.xlu1 %1446, %v477_v26   ;;  %543 = vperm.xlu2 %1447, %v475_v40   ;;  %v329_v26 = vmul.f32 %v1812_v59, %v1709_v23  ;;  %v332_v40 = vmul.f32 %v1825_v2, %v1729_v32  ;;  %v342_v23 = vmul.f32 %v334_v14, %v262_v24 }
  0xef   : > { %v337_v15 = vmul.f32 %v329_v26, %v1800_v52  ;;  %v340_v59 = vmul.f32 %v332_v40, %v1817_v63  ;;  %v484_v52 = vadd.s32 1, %v1957_v58  ;;  %v379_v63 = vmul.f32 %v1856_v54, %v1706_v22 }
  0xf0   : > { %546 = vperm.xlu0 %1455, %v476_v30   ;;  %v485_v30 = vadd.s32 1, %v469_v51 }
  0xf1   : > { %v387_v2 = vmul.f32 %v379_v63, %v1863_v62  ;;  %v465_v62 = vadd.s32 32, %v1904_v28 }
  0xf3   : > { %v481_v7 = vadd.s32 1, %v465_v62 }
  0xf5   : > { %558 = vperm.xlu1 %1446, %v480_v48   ;;  %552 = vperm.xlu2 %1447, %v478_v55   ;;  %v382_v48 = vmul.f32 %v1877_v10, %v1735_v36  ;;  %v482_v36 = vadd.s32 1, %v466_v45 }
  0xf7   : > { %v390_v55 = vmul.f32 %v382_v48, %v262_v24  ;;  %v1333_v48 = vld [vmem:[%s1680_s29 + $0x70] sm:$0xff] }
  0xf8   : > { %555 = vperm.xlu0 %1455, %v479_v38  }
  0xfd   : > { %1450 = vset.pattern.permute.xlu1 %v1568_v50  ;;  %1448 = vset.pattern.permute.xlu2 %v1568_v50 }
  0xfe   : > { %588 = vperm.xlu1 %1450, %v403_v43   ;;  %578 = vperm.xlu2 %1448, %v401_v41   ;;  %v490_v43 = vlaneseq }
 0x100   : > { %744 = vperm.xlu0 %1455, %v486_v11   ;;  %v491_v41 = vand.u32 127, %v490_v43  ;;  %v1323_v43 = vld [vmem:[%s1680_s29 + $0x20] sm:$0xff] }
 0x102   : > { %v492_v17 = vadd.s32 128, %v491_v41 }
 0x106   : > { %598 = vperm.xlu1 %1450, %v405_v19   ;;  %593 = vperm.xlu2 %1448, %v404_v21   ;;  %v493_v19 = vstv %s1247_s4 }
 0x108   : > { %692 = vperm.xlu0 %1455, %v466_v45   ;;  %v2011_v45 = vadd.s32 %v493_v19, %v491_v41  ;;  %v1322_v41 = vld [vmem:[%s1680_s29 + $0x18] sm:$0xff] }
 0x10e   : > { %613 = vperm.xlu1 %1450, %v408_v47   ;;  %603 = vperm.xlu2 %1448, %v406_v27  }
 0x110   : > { %747 = vperm.xlu0 %1455, %v487_v9  }
 0x116   : > { %644 = vperm.xlu1 %1450, %v339_v37   ;;  %634 = vperm.xlu2 %1448, %v337_v15  }
 0x118   : > { %710 = vperm.xlu0 %1455, %v1949_v20  }
 0x11e   : > { %659 = vperm.xlu1 %1450, %v342_v23   ;;  %649 = vperm.xlu2 %1448, %v340_v59   ;;  %v1334_v59 = vld [vmem:[%s1680_s29 + $0x78] sm:$0xff] }
 0x11f   : > { %1344 = vmatpush.bf16.msra.mxu3 %v1334_v59  ;;  %1069 = vmatpush.bf16.msra.mxu1 %v1334_v59 }
 0x120   : > { %738 = vperm.xlu0 %1455, %v484_v52  }
 0x121   : > { %v1961_v25 = vpop.permute.xlu0 %583 }
 0x123   : > { %1345 = vmatpush.bf16.msra.mxu3 %v1333_v48  ;;  %1070 = vmatpush.bf16.msra.mxu1 %v1333_v48 }
 0x126   : > { %1452 = vset.pattern.permute.xlu1 %v1569_v8  ;;  %1451 = vset.pattern.permute.xlu2 %v1569_v8 }
 0x127   : > { %701 = vperm.xlu1 %1452, %v469_v51   ;;  %741 = vperm.xlu2 %1451, %v485_v30  }
 0x128   : > { %1465 = vset.pattern.permute.xlu0 %v1568_v50 }
 0x129   : > { %664 = vperm.xlu0 %1465, %v1850_v34   ;;  %v1968_v32 = vpop.permute.xlu0 %608  ;;  %v414_v34 = vmul.f32 %v1877_v10, %v1726_v31 }
 0x12b   : > { %v422_v38 = vmul.f32 %v414_v34, %v262_v24  ;;  %v488_v24 = vadd.s32 1, %v1949_v20  ;;  %v1324_v34 = vld [vmem:[%s1680_s29 + $0x28] sm:$0xff] }
 0x12f   : > { %1453 = vset.pattern.permute.xlu1 %v1568_v50  ;;  %v1974_v61 = vpop.permute.xlu2 %503  ;;  %704 = vperm.xlu2 %1451, %v470_v33  }
 0x130   : > { %790 = vperm.xlu1 %1453, %v1882_v18   ;;  %v501_v18 = vpop.permute.xlu1 %500 }
 0x131   : > { %836 = vperm.xlu0 %1465, %v387_v2   ;;  %v640_v44 = vpop.permute.xlu0 %639  ;;  %vm522_vm2 = vcmp.eq.s32.totalorder %v2011_v45, %v501_v18 }
 0x137   : > { %v1981_v22 = vpop.permute.xlu2 %509  ;;  %1454 = vset.pattern.permute.xlu2 %v1568_v50 }
 0x138   : > { %851 = vperm.xlu1 %1453, %v390_v55   ;;  %795 = vperm.xlu2 %1454, %v422_v38   ;;  %v1332_v55 = vld [vmem:[%s1680_s29 + $0x68] sm:$0xff]  ;;  %v467_v38 = vadd.s32 32, %v1899_v39  ;;  %vm528_vm14 = vcmp.eq.s32.totalorder %v2011_v45, %v1981_v22 }
 0x139   : > { %v1984_v54 = vpop.permute.xlu0 %654  ;;  %1346 = vmatpush.bf16.msra.mxu3 %v1332_v55  ;;  %1071 = vmatpush.bf16.msra.mxu1 %v1332_v55 }
 0x13f   : > { %v1987_v60 = vpop.permute.xlu2 %518 }
 0x140   : > { %1457 = vset.pattern.permute.xlu1 %v1569_v8  ;;  %1456 = vset.pattern.permute.xlu2 %v1569_v8 }
 0x141   : > { %732 = vperm.xlu1 %1457, %v482_v36   ;;  %729 = vperm.xlu2 %1456, %v481_v7   ;;  %v1991_v31 = vpop.permute.xlu0 %846 }
 0x147   : > { %v1993_v10 = vpop.permute.xlu1 %506  ;;  %v1995_v33 = vpop.permute.xlu2 %543 }
 0x148   : > { %vm564_vm10 = vcmp.eq.s32.totalorder %v2011_v45, %v1995_v33 }
 0x149   : > { %1458 = vset.pattern.permute.xlu1 %v1568_v50  ;;  %689 = vperm.xlu2 %1456, %v465_v62  }
 0x14a   : > { %770 = vperm.xlu1 %1458, %v1808_v57   ;;  %v1999_v28 = vpop.permute.xlu0 %497  ;;  %v2013_v57 = vadd.s32 %v493_v19, %v492_v17 }
 0x14b   : > { %vm520_vm12 = vcmp.eq.s32.totalorder %v2011_v45, %v1999_v28 }
 0x14c   : > { %vm523_vm3 = vcmp.eq.s32.totalorder %v2013_v57, %v501_v18  ;;  %vm565_vm11 = vcmp.eq.s32.totalorder %v2013_v57, %v1995_v33  ;;  %vm521_vm13 = vcmp.eq.s32.totalorder %v2013_v57, %v1999_v28  ;;  %vm529_vm15 = vcmp.eq.s32.totalorder %v2013_v57, %v1981_v22  ;;  %v1331_v28 = vld [vmem:[%s1680_s29 + $0x60] sm:$0xff] }
 0x14d   : > { %v483_v33 = vadd.s32 1, %v467_v38  ;;  %1347 = vmatpush.bf16.msra.mxu3 %v1331_v28  ;;  %1072 = vmatpush.bf16.msra.mxu1 %v1331_v28 }
 0x14f   : > { %v2002_v11 = vpop.permute.xlu1 %515  ;;  %v2004_v16 = vpop.permute.xlu2 %552 }
 0x151   : > { %1459 = vset.pattern.permute.xlu2 %v1568_v50 }
 0x152   : > { %775 = vperm.xlu2 %1459, %v1870_v6   ;;  %v2008_v21 = vpop.permute.xlu0 %512  ;;  %826 = vperm.xlu1 %1458, %v1805_v56  }
 0x157   : > { %v541_v3 = vpop.permute.xlu1 %540 }
 0x158   : > { %vm562_vm0 = vcmp.eq.s32.totalorder %v2011_v45, %v541_v3  ;;  %vm563_vm1 = vcmp.eq.s32.totalorder %v2013_v57, %v541_v3  ;;  %v579_v46 = vpop.permute.xlu2 %578 }
 0x159   : > { %v618_v6 = vsel %vm562_vm0, %v1961_v25, 0.0  ;;  %v619_v56 = vsel %vm563_vm1, %v1961_v25, 0.0  ;;  %vm526_vm0 = vcmp.eq.s32.totalorder %v2011_v45, %v1993_v10  ;;  %vm527_vm1 = vcmp.eq.s32.totalorder %v2013_v57, %v1993_v10 }
 0x15a   : > { %831 = vperm.xlu2 %1459, %v1868_v4   ;;  %v538_v27 = vpop.permute.xlu0 %537  ;;  %1460 = vset.pattern.permute.xlu1 %v1569_v8  ;;  %v2024_v47 = vsel %vm522_vm2, %v640_v44, %v618_v6  ;;  %v2026_v9 = vsel %vm523_vm3, %v640_v44, %v619_v56  ;;  %v1325_v44 = vld [vmem:[%s1680_s29 + $0x30] sm:$0xff]  ;;  %v1320_v56 = vld [vmem:[%s1680_s29 + $0x8] sm:$0xff] }
 0x15b   : > { %750 = vperm.xlu1 %1460, %v488_v24   ;;  %vm560_vm8 = vcmp.eq.s32.totalorder %v2011_v45, %v538_v27  ;;  %vm561_vm9 = vcmp.eq.s32.totalorder %v2013_v57, %v538_v27  ;;  %v1329_v24 = vld [vmem:[%s1680_s29 + $0x50] sm:$0xff]  ;;  %v1328_v27 = vld [vmem:[%s1680_s29 + $0x48] sm:$0xff] }
 0x15f   : > { %v2028_v53 = vpop.permute.xlu1 %549 }
 0x160   : > { %v594_v26 = vpop.permute.xlu2 %593  ;;  %vm568_vm2 = vcmp.eq.s32.totalorder %v2011_v45, %v2028_v53  ;;  %vm569_vm3 = vcmp.eq.s32.totalorder %v2013_v57, %v2028_v53 }
 0x162   : > { %1461 = vset.pattern.permute.xlu2 %v1569_v8  ;;  %v547_v37 = vpop.permute.xlu0 %546 }
 0x163   : > { %vm566_vm4 = vcmp.eq.s32.totalorder %v2011_v45, %v547_v37  ;;  %vm567_vm5 = vcmp.eq.s32.totalorder %v2013_v57, %v547_v37  ;;  %707 = vperm.xlu2 %1461, %v1939_v49   ;;  %1462 = vset.pattern.permute.xlu1 %v1568_v50  ;;  %v1319_v37 = vld [vmem:[%s1680_s29] sm:$0xff] }
 0x164   : > { %v622_v4 = vsel %vm566_vm4, %v594_v26, 0.0  ;;  %v623_v15 = vsel %vm567_vm5, %v594_v26, 0.0  ;;  %800 = vperm.xlu1 %1462, %v1836_v13   ;;  %v1326_v13 = vld [vmem:[%s1680_s29 + $0x38] sm:$0xff] }
 0x165   : > { %1336 = vmatpush.bf16.msra.mxu2 %v1326_v13  ;;  %1040 = vmatpush.bf16.msra.mxu0 %v1326_v13 }
 0x167   : > { %v2036_v20 = vpop.permute.xlu1 %558 }
 0x168   : > { %v2038_v14 = vpop.permute.xlu2 %603  ;;  %vm574_vm4 = vcmp.eq.s32.totalorder %v2011_v45, %v2036_v20  ;;  %vm575_vm5 = vcmp.eq.s32.totalorder %v2013_v57, %v2036_v20 }
 0x169   : > { %1337 = vmatpush.bf16.msra.mxu2 %v1325_v44  ;;  %1041 = vmatpush.bf16.msra.mxu0 %v1325_v44 }
 0x16a   : > { %v556_v40 = vpop.permute.xlu0 %555 }
 0x16b   : > { %vm572_vm6 = vcmp.eq.s32.totalorder %v2011_v45, %v556_v40  ;;  %vm573_vm7 = vcmp.eq.s32.totalorder %v2013_v57, %v556_v40  ;;  %1463 = vset.pattern.permute.xlu2 %v1568_v50 }
 0x16c   : > { %v2044_v49 = vsel %vm572_vm6, %v1968_v32, 0.0  ;;  %v2047_v23 = vsel %vm573_vm7, %v1968_v32, 0.0  ;;  %805 = vperm.xlu2 %1463, %v1892_v42   ;;  %669 = vperm.xlu1 %1462, %v1848_v29   ;;  %v616_v29 = vsel %vm560_vm8, %v579_v46, 0.0  ;;  %v617_v42 = vsel %vm561_vm9, %v579_v46, 0.0  ;;  %v1321_v46 = vld [vmem:[%s1680_s29 + $0x10] sm:$0xff] }
 0x16d   : > { %1338 = vmatpush.bf16.msra.mxu2 %v1324_v34  ;;  %1042 = vmatpush.bf16.msra.mxu0 %v1324_v34  ;;  %vm524_vm6 = vcmp.eq.s32.totalorder %v2011_v45, %v1974_v61  ;;  %vm525_vm7 = vcmp.eq.s32.totalorder %v2013_v57, %v1974_v61  ;;  %vm532_vm8 = vcmp.eq.s32.totalorder %v2011_v45, %v2002_v11 }
 0x16e   : > { %vm533_vm9 = vcmp.eq.s32.totalorder %v2013_v57, %v2002_v11 }
 0x170   : > { %v589_v52 = vpop.permute.xlu1 %588  ;;  %v635_v25 = vpop.permute.xlu2 %634 }
 0x171   : > { %v2063_v51 = vsel %vm564_vm10, %v589_v52, 0.0  ;;  %v2065_v30 = vsel %vm565_vm11, %v589_v52, 0.0  ;;  %v2067_v32 = vsel %vm520_vm12, %v635_v25, %v616_v29  ;;  %v2069_v63 = vsel %vm521_vm13, %v635_v25, %v617_v42  ;;  %1339 = vmatpush.bf16.msra.mxu2 %v1323_v43  ;;  %1043 = vmatpush.bf16.msra.mxu0 %v1323_v43 }
 0x172   : > { %v2071_v2 = vpop.permute.xlu0 %744  ;;  %vm570_vm12 = vcmp.eq.s32.totalorder %v2011_v45, %v2004_v16  ;;  %vm571_vm13 = vcmp.eq.s32.totalorder %v2013_v57, %v2004_v16 }
 0x173   : > { %v626_v11 = vsel %vm570_vm12, %v2038_v14, 0.0 }
 0x174   : > { %856 = vperm.xlu2 %1463, %v1834_v12   ;;  %861 = vperm.xlu1 %1462, %v1889_v35  }
 0x175   : > { %1340 = vmatpush.bf16.msra.mxu2 %v1322_v41  ;;  %1044 = vmatpush.bf16.msra.mxu0 %v1322_v41 }
 0x178   : > { %v599_v12 = vpop.permute.xlu1 %598  ;;  %v650_v35 = vpop.permute.xlu2 %649 }
 0x179   : > { %v624_v39 = vsel %vm568_vm2, %v599_v12, 0.0  ;;  %v625_v62 = vsel %vm569_vm3, %v599_v12, 0.0  ;;  %v2092_v18 = vsel %vm526_vm0, %v650_v35, %v622_v4  ;;  %v2094_v22 = vsel %vm527_vm1, %v650_v35, %v623_v15  ;;  %1341 = vmatpush.bf16.msra.mxu2 %v1321_v46  ;;  %1045 = vmatpush.bf16.msra.mxu0 %v1321_v46  ;;  %v1327_v4 = vld [vmem:[%s1680_s29 + $0x40] sm:$0xff] }
 0x17a   : > { %v2097_v36 = vsel %vm528_vm14, %v1984_v54, %v624_v39  ;;  %v2100_v7 = vsel %vm529_vm15, %v1984_v54, %v625_v62  ;;  %v2102_v10 = vpop.permute.xlu0 %692  ;;  %v1330_v54 = vld [vmem:[%s1680_s29 + $0x58] sm:$0xff]  ;;  %vm530_vm14 = vcmp.eq.s32.totalorder %v2011_v45, %v2008_v21  ;;  %vm531_vm15 = vcmp.eq.s32.totalorder %v2013_v57, %v2008_v21 }
 0x17b   : > { %1348 = vmatpush.bf16.msra.mxu3 %v1330_v54  ;;  %1073 = vmatpush.bf16.msra.mxu1 %v1330_v54  ;;  %vm762_vm2 = vcmp.eq.s32.totalorder %v2011_v45, %v2071_v2  ;;  %vm763_vm3 = vcmp.eq.s32.totalorder %v2013_v57, %v2071_v2 }
 0x17c   : > { %1464 = vset.pattern.permute.xlu2 %v1569_v8  ;;  %1466 = vset.pattern.permute.xlu1 %v1569_v8 }
 0x17d   : > { %735 = vperm.xlu2 %1464, %v483_v33   ;;  %695 = vperm.xlu1 %1466, %v467_v38  }
 0x17e   : > { %1342 = vmatpush.bf16.msra.mxu2 %v1320_v56  ;;  %1046 = vmatpush.bf16.msra.mxu0 %v1320_v56 }
 0x17f   : > { %1349 = vmatpush.bf16.msra.mxu3 %v1329_v24  ;;  %1074 = vmatpush.bf16.msra.mxu1 %v1329_v24 }
 0x180   : > { %v614_v17 = vpop.permute.xlu1 %613 }
 0x181   : > { %v2114_v19 = vsel %vm574_vm4, %v614_v17, 0.0  ;;  %v2116_v8 = vsel %vm575_vm5, %v614_v17, 0.0  ;;  %v742_v6 = vpop.permute.xlu2 %741 }
 0x182   : > { %v2118_v3 = vpop.permute.xlu0 %747  ;;  %1343 = vmatpush.bf16.msra.mxu2 %v1319_v37  ;;  %1047 = vmatpush.bf16.msra.mxu0 %v1319_v37  ;;  %vm760_vm10 = vcmp.eq.s32.totalorder %v2011_v45, %v742_v6  ;;  %vm761_vm11 = vcmp.eq.s32.totalorder %v2013_v57, %v742_v6 }
 0x183   : > { %1350 = vmatpush.bf16.msra.mxu3 %v1328_v27  ;;  %1075 = vmatpush.bf16.msra.mxu1 %v1328_v27 }
 0x185   : > { %698 = vperm.xlu2 %1464, %v1957_v58   ;;  %1467 = vset.pattern.permute.xlu1 %v1568_v50 }
 0x186   : > { %780 = vperm.xlu1 %1467, %v1866_v5  }
 0x187   : > { %1351 = vmatpush.bf16.msra.mxu3 %v1327_v4  ;;  %1076 = vmatpush.bf16.msra.mxu1 %v1327_v4 }
 0x188   : > { %v645_v53 = vpop.permute.xlu1 %644 }
 0x189   : > { %v2132_v58 = vsel %vm524_vm6, %v645_v53, %v2063_v51  ;;  %v2135_v26 = vsel %vm525_vm7, %v645_v53, %v2065_v30  ;;  %v705_v15 = vpop.permute.xlu2 %704 }
 0x18a   : > { %v2137_v5 = vpop.permute.xlu0 %710  ;;  %vm722_vm4 = vcmp.eq.s32.totalorder %v2011_v45, %v705_v15  ;;  %vm723_vm5 = vcmp.eq.s32.totalorder %v2013_v57, %v705_v15 }
 0x18d   : > { %1468 = vset.pattern.permute.xlu2 %v1568_v50 }
 0x18e   : > { %785 = vperm.xlu2 %1468, %v1823_v1   ;;  %841 = vperm.xlu1 %1467, %v1820_v0  }
 0x190   : > { %v660_v61 = vpop.permute.xlu1 %659 }
 0x191   : > { %v682_v51 = vsel %vm530_vm14, %v660_v61, %v626_v11  ;;  %vm534_vm14 = vcmp.eq.s32.totalorder %v2011_v45, %v1987_v60 }
 0x192   : > { %v2144_v20 = vpop.permute.xlu0 %738  ;;  %v796_v40 = vpop.permute.xlu2 %795 }
 0x193   : > { %v818_v21 = vsel %vm762_vm2, %v796_v40, 0.0 }
 0x199   : > { %v702_v13 = vpop.permute.xlu1 %701 }
 0x19a   : > { %vm720_vm0 = vcmp.eq.s32.totalorder %v2011_v45, %v702_v13  ;;  %vm721_vm1 = vcmp.eq.s32.totalorder %v2013_v57, %v702_v13 }
 0x19b   : > { %v665_v50 = vpop.permute.xlu0 %664  ;;  %v730_v59 = vpop.permute.xlu2 %729 }
 0x19c   : > { %v2151_v1 = vsel %vm532_vm8, %v665_v50, %v2044_v49  ;;  %v2154_v0 = vsel %vm533_vm9, %v665_v50, %v2047_v23  ;;  %v627_v49 = vsel %vm571_vm13, %v2038_v14, 0.0  ;;  %v819_v14 = vsel %vm763_vm3, %v796_v40, 0.0 }
 0x19d   : > { %v683_v30 = vsel %vm531_vm15, %v660_v61, %v627_v49  ;;  %vm714_vm8 = vcmp.eq.s32.totalorder %v2011_v45, %v2102_v10  ;;  %vm715_vm9 = vcmp.eq.s32.totalorder %v2013_v57, %v2102_v10  ;;  %vm535_vm15 = vcmp.eq.s32.totalorder %v2013_v57, %v1987_v60 }
 0x1a2   : > { %v791_v29 = vpop.permute.xlu1 %790 }
 0x1a3   : > { %v816_v42 = vsel %vm760_vm10, %v791_v29, 0.0  ;;  %v817_v52 = vsel %vm761_vm11, %v791_v29, 0.0  ;;  %v690_v34 = vpop.permute.xlu2 %689  ;;  %vm752_vm10 = vcmp.eq.s32.totalorder %v2011_v45, %v730_v59  ;;  %vm753_vm11 = vcmp.eq.s32.totalorder %v2013_v57, %v730_v59 }
 0x1a4   : > { %v872_v16 = vsel %vm720_vm0, %v1991_v31, %v816_v42  ;;  %v873_v23 = vsel %vm721_vm1, %v1991_v31, %v817_v52  ;;  %vm712_vm12 = vcmp.eq.s32.totalorder %v2011_v45, %v690_v34  ;;  %vm713_vm13 = vcmp.eq.s32.totalorder %v2013_v57, %v690_v34 }
 0x1a5   : > { %v888_v2 = vadd.f32 %v872_v16, %v2097_v36  ;;  %v889_v12 = vadd.f32 %v873_v23, %v2100_v7  ;;  %vm764_vm0 = vcmp.eq.s32.totalorder %v2011_v45, %v2118_v3  ;;  %vm765_vm1 = vcmp.eq.s32.totalorder %v2013_v57, %v2118_v3 }
 0x1aa   : > { %v852_v25 = vpop.permute.xlu1 %851 }
 0x1ab   : > { %v874_v44 = vsel %vm722_vm4, %v852_v25, %v818_v21  ;;  %v875_v48 = vsel %vm723_vm5, %v852_v25, %v819_v14 }
 0x1ac   : > { %v890_v55 = vadd.f32 %v874_v44, %v682_v51  ;;  %v891_v38 = vadd.f32 %v875_v48, %v683_v30  ;;  %v776_v62 = vpop.permute.xlu2 %775 }
 0x1ae   : > { %v900_v35 = vpack.c.bf16 %v890_v55, %v888_v2  ;;  %v901_v31 = vpack.c.bf16 %v891_v38, %v889_v12  ;;  %v837_v55 = vpop.permute.xlu0 %836 }
 0x1b0   : > { %1058 = vmatmul.bf16.vlgmr.msra.gmra.mxu2 %v900_v35  ;;  %1087 = vmatmul.bf16.vlgmr.msra.gmra.mxu3 %v901_v31 }
 0x1b3   : > { %v733_v39 = vpop.permute.xlu1 %732 }
 0x1b4   : > { %vm754_vm6 = vcmp.eq.s32.totalorder %v2011_v45, %v733_v39  ;;  %vm755_vm7 = vcmp.eq.s32.totalorder %v2013_v57, %v733_v39  ;;  %v832_v41 = vpop.permute.xlu2 %831 }
 0x1b5   : > { %v810_v43 = vsel %vm754_vm6, %v776_v62, 0.0  ;;  %v811_v28 = vsel %vm755_vm7, %v776_v62, 0.0  ;;  %vm726_vm6 = vcmp.eq.s32.totalorder %v2011_v45, %v2137_v5  ;;  %vm727_vm7 = vcmp.eq.s32.totalorder %v2013_v57, %v2137_v5 }
 0x1b6   : > { %v866_v36 = vsel %vm714_vm8, %v832_v41, %v810_v43  ;;  %v867_v7 = vsel %vm715_vm9, %v832_v41, %v811_v28  ;;  %v908_v28 = vld [vmem:[%s1682_s22 + $0x20] sm:$0xff] }
 0x1b7   : > { %v882_v56 = vadd.f32 %v866_v36, %v2024_v47  ;;  %v883_v27 = vadd.f32 %v867_v7, %v2026_v9 }
 0x1bc   : > { %v771_v33 = vpop.permute.xlu1 %770 }
 0x1bd   : > { %v808_v54 = vsel %vm752_vm10, %v771_v33, 0.0  ;;  %v809_v17 = vsel %vm753_vm11, %v771_v33, 0.0  ;;  %v708_v15 = vpop.permute.xlu2 %707 }
 0x1be   : > { %vm724_vm4 = vcmp.eq.s32.totalorder %v2011_v45, %v708_v15  ;;  %vm725_vm5 = vcmp.eq.s32.totalorder %v2013_v57, %v708_v15 }
 0x1c4   : > { %v827_v46 = vpop.permute.xlu1 %826 }
 0x1c5   : > { %v864_v24 = vsel %vm712_vm12, %v827_v46, %v808_v54  ;;  %v865_v6 = vsel %vm713_vm13, %v827_v46, %v809_v17  ;;  %vm758_vm12 = vcmp.eq.s32.totalorder %v2011_v45, %v2144_v20  ;;  %vm759_vm13 = vcmp.eq.s32.totalorder %v2013_v57, %v2144_v20  ;;  %v904_v46 = vld [vmem:[%s1682_s22] sm:$0xff] }
 0x1c6   : > { %v880_v10 = vadd.f32 %v864_v24, %v2067_v32  ;;  %v881_v53 = vadd.f32 %v865_v6, %v2069_v63  ;;  %v806_v40 = vpop.permute.xlu2 %805 }
 0x1c8   : > { %v896_v37 = vpack.c.bf16 %v882_v56, %v880_v10  ;;  %v897_v4 = vpack.c.bf16 %v883_v27, %v881_v53  ;;  %v905_v10 = vld [vmem:[%s1682_s22 + $0x8] sm:$0xff] }
 0x1ca   : > { %1048 = vmatmul.bf16.vlgmr.msra.gmra.mxu0 %v896_v37  ;;  %1077 = vmatmul.bf16.vlgmr.msra.gmra.mxu1 %v897_v4 }
 0x1cd   : > { %v751_v61 = vpop.permute.xlu1 %750 }
 0x1ce   : > { %v857_v9 = vpop.permute.xlu2 %856  ;;  %vm766_vm2 = vcmp.eq.s32.totalorder %v2011_v45, %v751_v61  ;;  %vm767_vm3 = vcmp.eq.s32.totalorder %v2013_v57, %v751_v61  ;;  %v910_v61 = vld [vmem:[%s1682_s22 + $0x30] sm:$0xff] }
 0x1cf   : > { %v823_v3 = vsel %vm767_vm3, %v806_v40, 0.0 }
 0x1d6   : > { %v801_v13 = vpop.permute.xlu1 %800 }
 0x1d7   : > { %v820_v50 = vsel %vm764_vm0, %v801_v13, 0.0  ;;  %v821_v59 = vsel %vm765_vm1, %v801_v13, 0.0  ;;  %v736_v21 = vpop.permute.xlu2 %735 }
 0x1d8   : > { %v876_v60 = vsel %vm724_vm4, %v857_v9, %v820_v50  ;;  %vm756_vm8 = vcmp.eq.s32.totalorder %v2011_v45, %v736_v21  ;;  %vm757_vm9 = vcmp.eq.s32.totalorder %v2013_v57, %v736_v21 }
 0x1d9   : > { %v892_v16 = vadd.f32 %v876_v60, %v2151_v1 }
 0x1de   : > { %v670_v47 = vpop.permute.xlu1 %669 }
 0x1df   : > { %v686_v32 = vsel %vm534_vm14, %v670_v47, %v2114_v19  ;;  %v687_v63 = vsel %vm535_vm15, %v670_v47, %v2116_v8  ;;  %v877_v19 = vsel %vm725_vm5, %v857_v9, %v821_v59  ;;  %v822_v8 = vsel %vm766_vm2, %v806_v40, 0.0  ;;  %v699_v30 = vpop.permute.xlu2 %698 }
 0x1e0   : > { %v893_v23 = vadd.f32 %v877_v19, %v2154_v0  ;;  %vm718_vm14 = vcmp.eq.s32.totalorder %v2011_v45, %v699_v30  ;;  %vm719_vm15 = vcmp.eq.s32.totalorder %v2013_v57, %v699_v30  ;;  %v906_v19 = vld [vmem:[%s1682_s22 + $0x10] sm:$0xff] }
 0x1e6   : > { %v862_v29 = vpop.permute.xlu1 %861 }
 0x1e7   : > { %v878_v42 = vsel %vm726_vm6, %v862_v29, %v822_v8  ;;  %v879_v52 = vsel %vm727_vm7, %v862_v29, %v823_v3 }
 0x1e8   : > { %v894_v11 = vadd.f32 %v878_v42, %v686_v32  ;;  %v895_v49 = vadd.f32 %v879_v52, %v687_v63  ;;  %v786_v34 = vpop.permute.xlu2 %785  ;;  %v911_v32 = vld [vmem:[%s1682_s22 + $0x38] sm:$0xff] }
 0x1e9   : > { %v814_v38 = vsel %vm758_vm12, %v786_v34, 0.0  ;;  %v815_v2 = vsel %vm759_vm13, %v786_v34, 0.0  ;;  %v907_v52 = vld [vmem:[%s1682_s22 + $0x18] sm:$0xff] }
 0x1ea   : > { %v902_v14 = vpack.c.bf16 %v894_v11, %v892_v16  ;;  %v903_v25 = vpack.c.bf16 %v895_v49, %v893_v23 }
 0x1ec   : > { %1063 = vmatmul.bf16.gmra.mxu2 %v902_v14  ;;  %1092 = vmatmul.bf16.gmra.mxu3 %v903_v25 }
 0x1ef   : > { %v696_v51 = vpop.permute.xlu1 %695 }
 0x1f0   : > { %vm716_vm10 = vcmp.eq.s32.totalorder %v2011_v45, %v696_v51  ;;  %vm717_vm11 = vcmp.eq.s32.totalorder %v2013_v57, %v696_v51 }
 0x1f8   : > { %v781_v44 = vpop.permute.xlu1 %780 }
 0x1f9   : > { %v812_v5 = vsel %vm756_vm8, %v781_v44, 0.0  ;;  %v813_v48 = vsel %vm757_vm9, %v781_v44, 0.0 }
 0x1fa   : > { %v868_v1 = vsel %vm716_vm10, %v837_v55, %v812_v5  ;;  %v869_v0 = vsel %vm717_vm11, %v837_v55, %v813_v48 }
 0x1fb   : > { %v884_v20 = vadd.f32 %v868_v1, %v2132_v58  ;;  %v885_v33 = vadd.f32 %v869_v0, %v2135_v26 }
 0x200   : > { %v842_v12 = vpop.permute.xlu1 %841 }
 0x201   : > { %v870_v35 = vsel %vm718_vm14, %v842_v12, %v814_v38  ;;  %v871_v31 = vsel %vm719_vm15, %v842_v12, %v815_v2 }
 0x202   : > { %v886_v39 = vadd.f32 %v870_v35, %v2092_v18  ;;  %v887_v62 = vadd.f32 %v871_v31, %v2094_v22  ;;  %v909_v22 = vld [vmem:[%s1682_s22 + $0x28] sm:$0xff] }
 0x204   : > { %v898_v45 = vpack.c.bf16 %v886_v39, %v884_v20  ;;  %v899_v43 = vpack.c.bf16 %v887_v62, %v885_v33 }
 0x206   : > { %1053 = vmatmul.bf16.gmra.mxu0 %v898_v45  ;;  %1082 = vmatmul.bf16.gmra.mxu1 %v899_v43 }
 0x233   : > { %v1059_v57 = vpop.f32.mrf.mxu2  ;;  %v1088_v41 = vpop.f32.mrf.mxu3 }
 0x234   : > { %v1089_v36 = vadd.f32 %v1088_v41, %v1059_v57 }
 0x236   : > { %v1102_v7 = vadd.f32 %v1089_v36, %v908_v28 }
 0x238   : > { %1110 = vst [vmem:[%s1682_s22 + $0x20] sm:$0xff] %v1102_v7 }
 0x23b   : > { %v1061_v18 = vpop.f32.mrf.mxu2  ;;  %v1090_v58 = vpop.f32.mrf.mxu3 }
 0x23c   : > { %v1091_v54 = vadd.f32 %v1090_v58, %v1061_v18 }
 0x23e   : > { %v1103_v26 = vadd.f32 %v1091_v54, %v909_v22 }
 0x240   : > { %1111 = vst [vmem:[%s1682_s22 + $0x28] sm:$0xff] %v1103_v26 }
 0x247   : > { %v1049_v17 = vpop.f32.mrf.mxu0  ;;  %v1078_v24 = vpop.f32.mrf.mxu1 }
 0x248   : > { %v1079_v6 = vadd.f32 %v1078_v24, %v1049_v17 }
 0x24a   : > { %v1098_v56 = vadd.f32 %v1079_v6, %v904_v46 }
 0x24c   : > { %1106 = vst [vmem:[%s1682_s22] sm:$0xff] %v1098_v56 }
 0x24f   : > { %v1051_v27 = vpop.f32.mrf.mxu0  ;;  %v1080_v53 = vpop.f32.mrf.mxu1 }
 0x250   : > { %v1081_v37 = vadd.f32 %v1080_v53, %v1051_v27 }
 0x252   : > { %v1099_v4 = vadd.f32 %v1081_v37, %v905_v10 }
 0x254   : > { %1107 = vst [vmem:[%s1682_s22 + $0x8] sm:$0xff] %v1099_v4 }
 0x26f   : > { %v1064_v15 = vpop.f32.mrf.mxu2  ;;  %v1093_v40 = vpop.f32.mrf.mxu3 }
 0x270   : > { %v1094_v13 = vadd.f32 %v1093_v40, %v1064_v15 }
 0x272   : > { %v1104_v47 = vadd.f32 %v1094_v13, %v910_v61 }
 0x274   : > { %1112 = vst [vmem:[%s1682_s22 + $0x30] sm:$0xff] %v1104_v47 }
 0x277   : > { %v1066_v9 = vpop.f32.mrf.mxu2  ;;  %v1095_v63 = vpop.f32.mrf.mxu3 }
 0x278   : > { %v1096_v50 = vadd.f32 %v1095_v63, %v1066_v9 }
 0x27a   : > { %v1105_v59 = vadd.f32 %v1096_v50, %v911_v32 }
 0x27c   : > { %1113 = vst [vmem:[%s1682_s22 + $0x38] sm:$0xff] %v1105_v59 }
 0x283   : > { %v1054_v60 = vpop.f32.mrf.mxu0  ;;  %v1083_v8 = vpop.f32.mrf.mxu1 }
 0x284   : > { %v1084_v3 = vadd.f32 %v1083_v8, %v1054_v60 }
 0x286   : > { %v1100_v29 = vadd.f32 %v1084_v3, %v906_v19 }
 0x288   : > { %1108 = vst [vmem:[%s1682_s22 + $0x10] sm:$0xff] %v1100_v29 }
 0x28b   : > { %v1056_v42 = vpop.f32.mrf.mxu0  ;;  %v1085_v11 = vpop.f32.mrf.mxu1 }
 0x28c   : > { %v1086_v49 = vadd.f32 %v1085_v11, %v1056_v42 }
 0x28e   : > { %v1101_v16 = vadd.f32 %v1086_v49, %v907_v52 }
 0x290   : > { %1109 = vst [vmem:[%s1682_s22 + $0x18] sm:$0xff] %v1101_v16 }
 0x291   : > { %1496 = shalt.err (!%p1493_p8)
}
 0x292   : > { %s1570_s22 = smov 128   ;;  %s1571_s30 = smov 8  }
 0x293   : > { %1368 = dma.vmem_to_hbm [thread:$0]  (%p1641_p3), %s1128_s7, 1024, %s1130_s8, %s1115_s10, %s1570_s22, %s1570_s22, %s1571_s30  }
 0x294 PF: > { %p1374_p10 = scmp.ge.s32.totalorder %s1563_s19, 2  ;;  %s1144_s4 = sand.u32 1, %s1535_s12  }
 0x295   : > { %s1145_s15 = scalar_lea.sflag [#allocation3], %s1144_s4 }
 0x296   : > { %p1371_p11 = pnand %p1374_p10, %p1651_p9 }
 0x298   : > { %p1372_p12 = pneg %p1371_p11 }
 0x29a   : > { %1530 = dma.done.wait (%p1372_p12), %s1145_s15, 1024  }
 0x29b   : > { %1532 = vsyncadd (%p1372_p12), %s1145_s15, 4294966272  ;;  %s16_s19 = sadd.s32 1, %s1563_s19   ;;  %s2300_s24 = sld [smem:[#allocation5_spill]] }
 0x29c   : > { %p13_p13 = scmp.ge.s32.totalorder %s16_s19, 6   ;;  %s2301_s29 = sld [smem:[#allocation6_spill]] }
 0x29d   : > { %s2302_s12 = smov %s1539_s13  ;;  %s2303_s13 = smov %s1543_s14 }
 0x29e   : > { %s2304_s14 = smov %s1659_s28  ;;  %s2305_s15 = smov %s1555_s17 }
 0x29f   : > { %s2306_s16 = smov %s1559_s18  ;;  %15 = sbr.rel (!%p13_p13) target bundleno = 5 (0x5), region = 77 }
 0x2a1   : > { %s2307_s17 = smov %s2300_s24 }
 0x2a2   : > { %s2308_s18 = smov %s2301_s29 }
 0x2a4   :  { %1151 = vsyncpa [#allocation3], 1 }
 0x2a5   :  { %1153 = vsyncpa [#allocation3 + $0x1], 1 }

</bundles_post_ra>
